<compile_context>
chip_gen: v6e
topology: v6e:2x2x1
jax: 0.10.0
libtpu: 0.0.40
codegen_flags: <defaults>
</compile_context>

<pallas_src>
import functools
import numpy as np
import jax
import jax.numpy as jnp
from jax.experimental import pallas as pl
from jax.experimental.pallas import tpu as pltpu

PAD = 0
LN_EPS = 1e-5          # torch nn.LayerNorm default
NEG_INF = -1e30


# -----------------------------------------------------------------------------
# Fused whole-decoder Pallas kernel
# -----------------------------------------------------------------------------

def _decoder_stack_kernel(
        dec_ref, enc_ref, aux_ref, padk_ref,
        sa_wqkv_ref, sa_wfc_ref, ea_wq_ref, ea_wkv_ref, ea_wfc_ref,
        ff_w1_ref, ff_w2_ref, dvec_ref, bvec_ref,
        out_ref, *, n_layers, n_head, d_k, d_v, seq_len, eps):
    S, D = dec_ref.shape[1], dec_ref.shape[2]      # S = NB * L (flattened tokens)
    Se = enc_ref.shape[1]                          # Se = NB * Le
    L = seq_len
    NB = S // L
    Le = Se // NB
    Di = ff_w1_ref.shape[2]
    Hdk, Hdv = n_head * d_k, n_head * d_v
    scale = 1.0 / float(np.sqrt(d_k))

    x = dec_ref[0]            # (S, D)  decoder activations — stay in VMEM
    enc = enc_ref[0]          # (Se, D)
    aux = aux_ref[0]          # (S, 3) = [non_pad, batch*L, batch*Le]
    npad = aux[:, 0:1]        # (S, 1)  1.0 where target token is not PAD
    low = aux[:, 1:2]         # (S, 1)  first self-attn key index of this row's batch
    elow = aux[:, 2:3]        # (S, 1)  first enc key index of this row's batch
    padk = padk_ref[0]        # (1, S)  1.0 where target KEY is PAD

    # Block-diagonal causal + key-pad mask built in-kernel (no O(L^2) HBM DMA).
    qidx = jax.lax.broadcasted_iota(jnp.int32, (S, S), 0).astype(jnp.float32)
    kidx = jax.lax.broadcasted_iota(jnp.int32, (S, S), 1).astype(jnp.float32)
    slf_mask = (kidx < low) | (kidx > qidx) | (padk > 0.0)
    if NB > 1:
        keidx = jax.lax.broadcasted_iota(jnp.int32, (S, Se), 1).astype(jnp.float32)
        enc_mask = (keidx < elow) | (keidx >= elow + float(Le))
    else:
        # if_test == False path: src_seq is all ones -> encoder keys never padded.
        enc_mask = None

    def layer_norm(v, g, b):
        m = jnp.mean(v, axis=-1, keepdims=True)
        c = v - m
        var = jnp.mean(c * c, axis=-1, keepdims=True)   # biased variance (torch)
        return c * jax.lax.rsqrt(var + eps) * g + b

    def mha(q_all, k_all, v_all, mask, w_fc):
        # Output projection folded into the head loop as a sum of per-head
        # GEMMs (== concat(heads) @ w_fc) — attention probs never leave vregs.
        out = None
        for h in range(n_head):                        # tiny static unroll
            q = q_all[:, h * d_k:(h + 1) * d_k]
            k = k_all[:, h * d_k:(h + 1) * d_k]
            v = v_all[:, h * d_v:(h + 1) * d_v]
            s = jax.lax.dot_general(q, k, (((1,), (1,)), ((), ())),
                                    preferred_element_type=jnp.float32) * scale
            if mask is not None:
                s = jnp.where(mask, jnp.float32(NEG_INF), s)
            s = s - jnp.max(s, axis=-1, keepdims=True)
            e = jnp.exp(s)
            p = e * pl.reciprocal(jnp.sum(e, axis=-1, keepdims=True), approx=True)
            o = jnp.dot(p, v, preferred_element_type=jnp.float32)
            c = jnp.dot(o, w_fc[h * d_v:(h + 1) * d_v, :],
                        preferred_element_type=jnp.float32)
            out = c if out is None else out + c
        return out

    for l in range(n_layers):                 # static unroll over layers
        dv = dvec_ref[l]                      # (9, D)    D-sized biases/LN params
        bv = bvec_ref[l]                      # (4, Wmax) other biases (zero padded)

        # ---- masked multi-head self-attention (fused Q|K|V GEMM) ----
        qkv = (jnp.dot(x, sa_wqkv_ref[l], preferred_element_type=jnp.float32)
               + bv[0:1, :2 * Hdk + Hdv])
        y = mha(qkv[:, :Hdk], qkv[:, Hdk:2 * Hdk], qkv[:, 2 * Hdk:2 * Hdk + Hdv],
                slf_mask, sa_wfc_ref[l]) + dv[0:1]
        x = layer_norm(y + x, dv[1:2], dv[2:3]) * npad

        # ---- encoder-decoder attention (fused K|V GEMM on encoder output) ----
        q_all = (jnp.dot(x, ea_wq_ref[l], preferred_element_type=jnp.float32)
                 + bv[1:2, :Hdk])
        kv = (jnp.dot(enc, ea_wkv_ref[l], preferred_element_type=jnp.float32)
              + bv[2:3, :Hdk + Hdv])
        y = mha(q_all, kv[:, :Hdk], kv[:, Hdk:Hdk + Hdv],
                enc_mask, ea_wfc_ref[l]) + dv[3:4]
        x = layer_norm(y + x, dv[4:5], dv[5:6]) * npad

        # ---- position-wise FFN (Conv1d k=1 == matmul) ----
        h1 = jnp.maximum(
            jnp.dot(x, ff_w1_ref[l], preferred_element_type=jnp.float32)
            + bv[3:4, :Di], 0.0)
        y = jnp.dot(h1, ff_w2_ref[l], preferred_element_type=jnp.float32) + dv[6:7]
        x = layer_norm(y + x, dv[7:8], dv[8:9]) * npad
        # TODO(synk): dropout(p=0.1) on attention probs / FC / FFN outputs omitted
        # (deterministic inference path — identity).

    out_ref[0] = x


# -----------------------------------------------------------------------------
# Wrapper: param packing + pallas_call setup
# -----------------------------------------------------------------------------

def _num_parallel_cores():
    """2-way batch split only on chips with 2 TensorCores (v7x); else 1."""
    try:
        kind = jax.devices()[0].device_kind.lower()
    except Exception:
        kind = ""
    return 2 if "v7" in kind else 1


def _pack_layer_params(layers):
    """Stack per-layer params on a leading layer axis; pack small vectors."""
    keys = ("sa_wqkv", "sa_wfc", "ea_wq", "ea_wkv", "ea_wfc", "ff_w1", "ff_w2")
    mats = {k: [] for k in keys}
    dvecs, bvecs = [], []
    wmax = max(layers[0]["slf_attn"]["b_qkv"].shape[1],
               layers[0]["enc_attn"]["b_q"].shape[1],
               layers[0]["enc_attn"]["b_kv"].shape[1],
               layers[0]["pos_ffn"]["b1"].shape[1])

    def pad_row(v):
        return jnp.pad(v, ((0, 0), (0, wmax - v.shape[1])))

    for lp in layers:
        sa, ea, ff = lp["slf_attn"], lp["enc_attn"], lp["pos_ffn"]
        mats["sa_wqkv"].append(sa["w_qkv"]); mats["sa_wfc"].append(sa["w_fc"])
        mats["ea_wq"].append(ea["w_q"]);     mats["ea_wkv"].append(ea["w_kv"])
        mats["ea_wfc"].append(ea["w_fc"])
        mats["ff_w1"].append(ff["w1"]);      mats["ff_w2"].append(ff["w2"])
        dvecs.append(jnp.concatenate(
            [sa["b_fc"], sa["ln_g"], sa["ln_b"],
             ea["b_fc"], ea["ln_g"], ea["ln_b"],
             ff["b2"], ff["ln_g"], ff["ln_b"]], axis=0))          # (9, D)
        bvecs.append(jnp.concatenate(
            [pad_row(sa["b_qkv"]), pad_row(ea["b_q"]),
             pad_row(ea["b_kv"]), pad_row(ff["b1"])], axis=0))    # (4, Wmax)

    stacked = [jnp.stack(mats[k], axis=0) for k in keys]
    stacked.append(jnp.stack(dvecs, axis=0))
    stacked.append(jnp.stack(bvecs, axis=0))
    return stacked


def _embed(params, tgt_seq, tgt_pos, global_feat):
    N, L = tgt_seq.shape
    # TODO(synk): embedding gathers + global-feature concat left to XLA — tiny
    # one-off gathers with no clean Pallas win at these shapes.
    dec = (jnp.take(params["tgt_word_emb"], tgt_seq, axis=0)
           + jnp.take(params["position_enc"], tgt_pos, axis=0))
    C = dec.shape[2]
    # TODO(synk): beam-search branch (dec batch != global_feat batch) not exercised.
    gf = jnp.broadcast_to(global_feat[:, None, :], (N, L, C))
    return jnp.concatenate([gf, dec], axis=2)          # (N, L, 2C = d_model)


def decoder_forward(params, tgt_seq, tgt_pos, src_seq, enc_output, global_feat,
                    n_head, d_k, d_v):
    del src_seq   # if_test == False path: src_seq is overwritten with ones
    dec = _embed(params, tgt_seq, tgt_pos, global_feat)
    N, L, D = dec.shape
    Le = enc_output.shape[1]
    layers = params["layers"]
    n_layers = len(layers)
    Hdk, Hdv = n_head * d_k, n_head * d_v
    Di = layers[0]["pos_ffn"]["w1"].shape[1]
    packed = _pack_layer_params(layers)
    wmax = packed[-1].shape[-1]

    G = _num_parallel_cores()
    if N % G != 0:
        G = 1
    NB = N // G
    S, Se = NB * L, NB * Le

    # O(L) per-token metadata used to rebuild the attention masks in-kernel.
    local_b = np.repeat(np.arange(NB, dtype=np.float32), L)             # (S,)
    low = jnp.asarray(np.broadcast_to(local_b * L, (G, S)).copy())
    elow = jnp.asarray(np.broadcast_to(local_b * Le, (G, S)).copy())
    non_pad = (tgt_seq != PAD).astype(jnp.float32).reshape(G, S)
    aux = jnp.stack([non_pad, low, elow], axis=-1)                      # (G, S, 3)
    padk = (tgt_seq == PAD).astype(jnp.float32).reshape(G, 1, S)        # (G, 1, S)

    dec_g = dec.reshape(G, S, D)
    enc_g = enc_output.reshape(G, Se, D)

    def bspec(shape):       # per-grid-step batch-group block
        nd = len(shape)
        return pl.BlockSpec((1,) + shape[1:],
                            lambda g, nd=nd: (g,) + (0,) * (nd - 1))

    def wspec(shape):       # replicated weight block (constant index map)
        nd = len(shape)
        return pl.BlockSpec(shape, lambda g, nd=nd: (0,) * nd)

    in_specs = [
        bspec((G, S, D)), bspec((G, Se, D)), bspec((G, S, 3)), bspec((G, 1, S)),
        wspec((n_layers, D, 2 * Hdk + Hdv)),
        wspec((n_layers, Hdv, D)),
        wspec((n_layers, D, Hdk)),
        wspec((n_layers, D, Hdk + Hdv)),
        wspec((n_layers, Hdv, D)),
        wspec((n_layers, D, Di)),
        wspec((n_layers, Di, D)),
        wspec((n_layers, 9, D)),
        wspec((n_layers, 4, wmax)),
    ]
    kernel = functools.partial(
        _decoder_stack_kernel, n_layers=n_layers, n_head=n_head,
        d_k=d_k, d_v=d_v, seq_len=L, eps=LN_EPS)
    out = pl.pallas_call(
        kernel,
        grid=(G,),
        in_specs=in_specs,
        out_specs=pl.BlockSpec((1, S, D), lambda g: (g, 0, 0)),
        out_shape=jax.ShapeDtypeStruct((G, S, D), jnp.float32),
        compiler_params=pltpu.CompilerParams(
            dimension_semantics=("parallel",)),
    )(dec_g, enc_g, aux, padk, *packed)
    # TODO(synk): heatmap(dec_enc_attn, ...) visualization hook skipped;
    # attention maps are not materialized (return_attns=False path only).
    return out.reshape(N, L, D)


# -----------------------------------------------------------------------------
# Pure-jnp reference (in-script correctness check)
# -----------------------------------------------------------------------------

def _ref_ln(x, g, b, eps=LN_EPS):
    m = x.mean(-1, keepdims=True)
    c = x - m
    v = (c * c).mean(-1, keepdims=True)
    return c * jax.lax.rsqrt(v + eps) * g + b


def _ref_mha(x_q, x_kv, mask, wq, bq, wk, bk, wv, bv, wfc, bfc, g, b,
             n_head, d_k, d_v):
    N, Lq, _ = x_q.shape
    Lk = x_kv.shape[1]
    q = (jnp.einsum("nld,de->nle", x_q, wq) + bq).reshape(N, Lq, n_head, d_k)
    k = (jnp.einsum("nld,de->nle", x_kv, wk) + bk).reshape(N, Lk, n_head, d_k)
    v = (jnp.einsum("nld,de->nle", x_kv, wv) + bv).reshape(N, Lk, n_head, d_v)
    s = jnp.einsum("nqhd,nkhd->nhqk", q, k) / np.sqrt(d_k)
    s = jnp.where(mask[:, None, :, :] > 0, NEG_INF, s)
    p = jax.nn.softmax(s, axis=-1)
    o = jnp.einsum("nhqk,nkhd->nqhd", p, v).reshape(N, Lq, n_head * d_v)
    o = jnp.einsum("nld,de->nle", o, wfc) + bfc
    return _ref_ln(o + x_q, g, b)


def _ref_layer(p, x, enc, npad, smask, emask, n_head, d_k, d_v):
    Hdk = n_head * d_k
    sa, ea, ff = p["slf_attn"], p["enc_attn"], p["pos_ffn"]
    w, bqkv = sa["w_qkv"], sa["b_qkv"]
    x = _ref_mha(x, x, smask,
                 w[:, :Hdk], bqkv[:, :Hdk],
                 w[:, Hdk:2 * Hdk], bqkv[:, Hdk:2 * Hdk],
                 w[:, 2 * Hdk:], bqkv[:, 2 * Hdk:],
                 sa["w_fc"], sa["b_fc"], sa["ln_g"], sa["ln_b"],
                 n_head, d_k, d_v) * npad
    x = _ref_mha(x, enc, emask,
                 ea["w_q"], ea["b_q"],
                 ea["w_kv"][:, :Hdk], ea["b_kv"][:, :Hdk],
                 ea["w_kv"][:, Hdk:], ea["b_kv"][:, Hdk:],
                 ea["w_fc"], ea["b_fc"], ea["ln_g"], ea["ln_b"],
                 n_head, d_k, d_v) * npad
    h = jnp.maximum(jnp.einsum("nld,de->nle", x, ff["w1"]) + ff["b1"], 0.0)
    y = jnp.einsum("nle,ed->nld", h, ff["w2"]) + ff["b2"]
    return _ref_ln(y + x, ff["ln_g"], ff["ln_b"]) * npad


def decoder_forward_ref(params, tgt_seq, tgt_pos, src_seq, enc_output,
                        global_feat, n_head, d_k, d_v):
    del src_seq
    dec = _embed(params, tgt_seq, tgt_pos, global_feat)
    N, L = tgt_seq.shape
    Le = enc_output.shape[1]
    non_pad = (tgt_seq != PAD).astype(jnp.float32)[:, :, None]
    subseq = jnp.triu(jnp.ones((L, L), jnp.float32), k=1)[None]
    keypad = jnp.broadcast_to((tgt_seq == PAD)[:, None, :],
                              (N, L, L)).astype(jnp.float32)
    slf_mask = ((keypad + subseq) > 0).astype(jnp.float32)
    enc_mask = jnp.zeros((N, L, Le), jnp.float32)   # src_seq == ones -> no mask
    for lp in params["layers"]:
        dec = _ref_layer(lp, dec, enc_output, non_pad, slf_mask, enc_mask,
                         n_head, d_k, d_v)
    return dec


# -----------------------------------------------------------------------------
# Deterministic parameter construction
# -----------------------------------------------------------------------------

def get_sinusoid_encoding_table(n_position, d_hid, padding_idx=None):
    def cal_angle(position, hid_idx):
        return float(position) / np.power(10000, 2 * (hid_idx // 2) / float(d_hid))
    table = np.array([[cal_angle(p, j) for j in range(d_hid)]
                      for p in range(n_position)], dtype=np.float64)
    table[:, 0::2] = np.sin(table[:, 0::2])
    table[:, 1::2] = np.cos(table[:, 1::2])
    if padding_idx is not None:
        table[padding_idx] = 0.0
    return jnp.asarray(table, dtype=jnp.float32)


def init_params(key, n_tgt_vocab, len_max_seq, d_word_vec, n_layers,
                n_head, d_k, d_v, d_model, d_inner):
    Hdk, Hdv = n_head * d_k, n_head * d_v
    keys = iter(jax.random.split(key, 1 + n_layers * 20))

    def nrm(shape, scale=0.05):
        return scale * jax.random.normal(next(keys), shape, dtype=jnp.float32)

    emb = nrm((n_tgt_vocab, d_word_vec)).at[PAD].set(0.0)   # padding_idx=PAD

    layers = []
    for _ in range(n_layers):
        layers.append({
            "slf_attn": {   # Q|K|V weights pre-fused into one GEMM
                "w_qkv": nrm((d_model, 2 * Hdk + Hdv)),
                "b_qkv": nrm((1, 2 * Hdk + Hdv)),
                "w_fc": nrm((Hdv, d_model)), "b_fc": nrm((1, d_model)),
                "ln_g": 1.0 + nrm((1, d_model)), "ln_b": nrm((1, d_model)),
            },
            "enc_attn": {   # K|V (from encoder) pre-fused; Q separate
                "w_q": nrm((d_model, Hdk)), "b_q": nrm((1, Hdk)),
                "w_kv": nrm((d_model, Hdk + Hdv)), "b_kv": nrm((1, Hdk + Hdv)),
                "w_fc": nrm((Hdv, d_model)), "b_fc": nrm((1, d_model)),
                "ln_g": 1.0 + nrm((1, d_model)), "ln_b": nrm((1, d_model)),
            },
            "pos_ffn": {
                "w1": nrm((d_model, d_inner)), "b1": nrm((1, d_inner)),
                "w2": nrm((d_inner, d_model)), "b2": nrm((1, d_model)),
                "ln_g": 1.0 + nrm((1, d_model)), "ln_b": nrm((1, d_model)),
            },
        })

    return {
        "tgt_word_emb": emb,
        "position_enc": get_sinusoid_encoding_table(len_max_seq + 1, d_word_vec,
                                                    padding_idx=0),
        "layers": layers,
    }


# -----------------------------------------------------------------------------
if __name__ == "__main__":
    # hyperparameters (global_feat dim == d_word_vec so concat -> d_model)
    n_tgt_vocab, len_max_seq = 50, 16
    d_word_vec, d_model, d_inner = 16, 32, 64
    n_layers, n_head, d_k, d_v = 2, 2, 16, 16
    N, L, L_enc = 2, 8, 8

    key = jax.random.PRNGKey(0)
    k_par, k_seq, k_enc, k_gf = jax.random.split(key, 4)

    params = init_params(k_par, n_tgt_vocab, len_max_seq, d_word_vec, n_layers,
                         n_head, d_k, d_v, d_model, d_inner)

    tgt_seq = jax.random.randint(k_seq, (N, L), 1, n_tgt_vocab, dtype=jnp.int32)
    tgt_seq = tgt_seq.at[1, -2:].set(PAD)           # some trailing padding
    tgt_pos = jnp.where(tgt_seq != PAD,
                        jnp.arange(1, L + 1, dtype=jnp.int32)[None, :], 0)
    src_seq = jnp.ones((N, L_enc), dtype=jnp.int32)
    enc_output = jax.random.normal(k_enc, (N, L_enc, d_model), dtype=jnp.float32)
    global_feat = jax.random.normal(k_gf, (N, d_word_vec), dtype=jnp.float32)

    fwd = jax.jit(decoder_forward, static_argnums=(6, 7, 8))
    dec_out = fwd(params, tgt_seq, tgt_pos, src_seq, enc_output, global_feat,
                  n_head, d_k, d_v)
    jax.block_until_ready(dec_out)

    ref_out = decoder_forward_ref(params, tgt_seq, tgt_pos, src_seq, enc_output,
                                  global_feat, n_head, d_k, d_v)

    assert dec_out.shape == (N, L, d_model)
    assert bool(jnp.all(jnp.isfinite(dec_out)))
    max_err = float(jnp.max(jnp.abs(dec_out - ref_out)))
    assert max_err < 1e-2, f"mismatch vs reference: {max_err}"
    print("KERNEL_OK")
</pallas_src>

<mosaic_0001>
module attributes {stable_mosaic.version = 11 : i64} {
  func.func @_decoder_stack_kernel(%arg0: i32, %arg1: memref<1x16x32xf32, #tpu.memory_space<vmem>>, %arg2: memref<1x16x32xf32, #tpu.memory_space<vmem>>, %arg3: memref<1x16x3xf32, #tpu.memory_space<vmem>>, %arg4: memref<1x1x16xf32, #tpu.memory_space<vmem>>, %arg5: memref<2x32x96xf32, #tpu.memory_space<vmem>>, %arg6: memref<2x32x32xf32, #tpu.memory_space<vmem>>, %arg7: memref<2x32x32xf32, #tpu.memory_space<vmem>>, %arg8: memref<2x32x64xf32, #tpu.memory_space<vmem>>, %arg9: memref<2x32x32xf32, #tpu.memory_space<vmem>>, %arg10: memref<2x32x64xf32, #tpu.memory_space<vmem>>, %arg11: memref<2x64x32xf32, #tpu.memory_space<vmem>>, %arg12: memref<2x9x32xf32, #tpu.memory_space<vmem>>, %arg13: memref<2x4x96xf32, #tpu.memory_space<vmem>>, %arg14: memref<1x16x32xf32, #tpu.memory_space<vmem>>) attributes {dimension_semantics = [#tpu.dimension_semantics<parallel>], iteration_bounds = array<i64: 1>, scalar_prefetch = 0 : i64, scratch_operands = 0 : i64, tpu.core_type = #tpu.core_type<tc>, window_params = [{transform_indices = @transform_0, window_bounds = array<i64: 1, 16, 32>}, {transform_indices = @transform_1, window_bounds = array<i64: 1, 16, 32>}, {transform_indices = @transform_2, window_bounds = array<i64: 1, 16, 3>}, {transform_indices = @transform_3, window_bounds = array<i64: 1, 1, 16>}, {pipeline_mode = #tpu.pipeline_mode<synchronous>, transform_indices = @transform_4, window_bounds = array<i64: 2, 32, 96>}, {pipeline_mode = #tpu.pipeline_mode<synchronous>, transform_indices = @transform_5, window_bounds = array<i64: 2, 32, 32>}, {pipeline_mode = #tpu.pipeline_mode<synchronous>, transform_indices = @transform_6, window_bounds = array<i64: 2, 32, 32>}, {pipeline_mode = #tpu.pipeline_mode<synchronous>, transform_indices = @transform_7, window_bounds = array<i64: 2, 32, 64>}, {pipeline_mode = #tpu.pipeline_mode<synchronous>, transform_indices = @transform_8, window_bounds = array<i64: 2, 32, 32>}, {pipeline_mode = #tpu.pipeline_mode<synchronous>, transform_indices = @transform_9, window_bounds = array<i64: 2, 32, 64>}, {pipeline_mode = #tpu.pipeline_mode<synchronous>, transform_indices = @transform_10, window_bounds = array<i64: 2, 64, 32>}, {pipeline_mode = #tpu.pipeline_mode<synchronous>, transform_indices = @transform_11, window_bounds = array<i64: 2, 9, 32>}, {pipeline_mode = #tpu.pipeline_mode<synchronous>, transform_indices = @transform_12, window_bounds = array<i64: 2, 4, 96>}, {transform_indices = @transform_13, window_bounds = array<i64: 1, 16, 32>}]} {
    %c0 = arith.constant 0 : index
    %c0_0 = arith.constant 0 : index
    %c0_1 = arith.constant 0 : index
    %0 = vector.load %arg1[%c0, %c0_0, %c0_1] : memref<1x16x32xf32, #tpu.memory_space<vmem>>, vector<1x16x32xf32>
    %1 = vector.shape_cast %0 : vector<1x16x32xf32> to vector<16x32xf32>
    %c0_2 = arith.constant 0 : index
    %c0_3 = arith.constant 0 : index
    %c0_4 = arith.constant 0 : index
    %2 = vector.load %arg2[%c0_2, %c0_3, %c0_4] : memref<1x16x32xf32, #tpu.memory_space<vmem>>, vector<1x16x32xf32>
    %3 = vector.shape_cast %2 : vector<1x16x32xf32> to vector<16x32xf32>
    %c0_5 = arith.constant 0 : index
    %c0_6 = arith.constant 0 : index
    %c0_7 = arith.constant 0 : index
    %4 = vector.load %arg3[%c0_5, %c0_6, %c0_7] : memref<1x16x3xf32, #tpu.memory_space<vmem>>, vector<1x16x3xf32>
    %5 = vector.shape_cast %4 : vector<1x16x3xf32> to vector<16x3xf32>
    %6 = vector.extract_strided_slice %5 {offsets = [0, 0], sizes = [16, 1], strides = [1, 1]} : vector<16x3xf32> to vector<16x1xf32>
    %7 = vector.extract_strided_slice %5 {offsets = [0, 1], sizes = [16, 1], strides = [1, 1]} : vector<16x3xf32> to vector<16x1xf32>
    %8 = vector.extract_strided_slice %5 {offsets = [0, 2], sizes = [16, 1], strides = [1, 1]} : vector<16x3xf32> to vector<16x1xf32>
    %c0_8 = arith.constant 0 : index
    %c0_9 = arith.constant 0 : index
    %c0_10 = arith.constant 0 : index
    %9 = vector.load %arg4[%c0_8, %c0_9, %c0_10] : memref<1x1x16xf32, #tpu.memory_space<vmem>>, vector<1x1x16xf32>
    %10 = vector.shape_cast %9 : vector<1x1x16xf32> to vector<1x16xf32>
    %11 = tpu.iota {dimensions = array<i32: 0>} : vector<16x16xi32>
    %12 = arith.sitofp %11 : vector<16x16xi32> to vector<16x16xf32>
    %13 = tpu.iota {dimensions = array<i32: 1>} : vector<16x16xi32>
    %14 = arith.sitofp %13 : vector<16x16xi32> to vector<16x16xf32>
    %15 = vector.broadcast %7 : vector<16x1xf32> to vector<16x16xf32>
    %16 = arith.cmpf olt, %14, %15 : vector<16x16xf32>
    %17 = arith.cmpf ogt, %14, %12 : vector<16x16xf32>
    %18 = arith.ori %16, %17 : vector<16x16xi1>
    %cst = arith.constant 0.000000e+00 : f32
    %19 = vector.broadcast %cst : f32 to vector<1x16xf32>
    %20 = arith.cmpf ogt, %10, %19 : vector<1x16xf32>
    %21 = vector.broadcast %20 : vector<1x16xi1> to vector<16x16xi1>
    %22 = arith.ori %18, %21 : vector<16x16xi1>
    %23 = tpu.iota {dimensions = array<i32: 1>} : vector<16x16xi32>
    %24 = arith.sitofp %23 : vector<16x16xi32> to vector<16x16xf32>
    %25 = vector.broadcast %8 : vector<16x1xf32> to vector<16x16xf32>
    %26 = arith.cmpf olt, %24, %25 : vector<16x16xf32>
    %cst_11 = arith.constant 8.000000e+00 : f32
    %27 = vector.broadcast %cst_11 : f32 to vector<16x1xf32>
    %28 = arith.addf %8, %27 : vector<16x1xf32>
    %29 = vector.broadcast %28 : vector<16x1xf32> to vector<16x16xf32>
    %30 = arith.cmpf oge, %24, %29 : vector<16x16xf32>
    %31 = arith.ori %26, %30 : vector<16x16xi1>
    %c0_12 = arith.constant 0 : index
    %c0_13 = arith.constant 0 : index
    %c0_14 = arith.constant 0 : index
    %32 = vector.load %arg12[%c0_12, %c0_13, %c0_14] : memref<2x9x32xf32, #tpu.memory_space<vmem>>, vector<1x9x32xf32>
    %33 = vector.shape_cast %32 : vector<1x9x32xf32> to vector<9x32xf32>
    %c0_15 = arith.constant 0 : index
    %c0_16 = arith.constant 0 : index
    %c0_17 = arith.constant 0 : index
    %34 = vector.load %arg13[%c0_15, %c0_16, %c0_17] : memref<2x4x96xf32, #tpu.memory_space<vmem>>, vector<1x4x96xf32>
    %35 = vector.shape_cast %34 : vector<1x4x96xf32> to vector<4x96xf32>
    %c0_18 = arith.constant 0 : index
    %c0_19 = arith.constant 0 : index
    %c0_20 = arith.constant 0 : index
    %36 = vector.load %arg5[%c0_18, %c0_19, %c0_20] : memref<2x32x96xf32, #tpu.memory_space<vmem>>, vector<1x32x96xf32>
    %37 = vector.shape_cast %36 : vector<1x32x96xf32> to vector<32x96xf32>
    %cst_21 = arith.constant dense<0.000000e+00> : vector<16x96xf32>
    %38 = tpu.matmul %1, %37, %cst_21 {dimension_numbers = #tpu.dot_dimension_numbers<[1], [0], [0], [1], [0, 0, 1, 1], [], []>} : vector<16x32xf32>, vector<32x96xf32>, vector<16x96xf32> -> vector<16x96xf32>
    %39 = vector.extract_strided_slice %35 {offsets = [0, 0], sizes = [1, 96], strides = [1, 1]} : vector<4x96xf32> to vector<1x96xf32>
    %40 = vector.broadcast %39 : vector<1x96xf32> to vector<16x96xf32>
    %41 = arith.addf %38, %40 : vector<16x96xf32>
    %42 = vector.extract_strided_slice %41 {offsets = [0, 0], sizes = [16, 32], strides = [1, 1]} : vector<16x96xf32> to vector<16x32xf32>
    %43 = vector.extract_strided_slice %41 {offsets = [0, 32], sizes = [16, 32], strides = [1, 1]} : vector<16x96xf32> to vector<16x32xf32>
    %44 = vector.extract_strided_slice %41 {offsets = [0, 64], sizes = [16, 32], strides = [1, 1]} : vector<16x96xf32> to vector<16x32xf32>
    %c0_22 = arith.constant 0 : index
    %c0_23 = arith.constant 0 : index
    %c0_24 = arith.constant 0 : index
    %45 = vector.load %arg6[%c0_22, %c0_23, %c0_24] : memref<2x32x32xf32, #tpu.memory_space<vmem>>, vector<1x32x32xf32>
    %46 = vector.shape_cast %45 : vector<1x32x32xf32> to vector<32x32xf32>
    %47 = vector.extract_strided_slice %42 {offsets = [0, 0], sizes = [16, 16], strides = [1, 1]} : vector<16x32xf32> to vector<16x16xf32>
    %48 = vector.extract_strided_slice %43 {offsets = [0, 0], sizes = [16, 16], strides = [1, 1]} : vector<16x32xf32> to vector<16x16xf32>
    %49 = vector.extract_strided_slice %44 {offsets = [0, 0], sizes = [16, 16], strides = [1, 1]} : vector<16x32xf32> to vector<16x16xf32>
    %cst_25 = arith.constant dense<0.000000e+00> : vector<16x16xf32>
    %50 = tpu.matmul %47, %48, %cst_25 {dimension_numbers = #tpu.dot_dimension_numbers<[1], [1], [0], [0], [0, 0, 1, 0], [], []>} : vector<16x16xf32>, vector<16x16xf32>, vector<16x16xf32> -> vector<16x16xf32>
    %cst_26 = arith.constant 2.500000e-01 : f32
    %51 = vector.broadcast %cst_26 : f32 to vector<16x16xf32>
    %52 = arith.mulf %50, %51 : vector<16x16xf32>
    %cst_27 = arith.constant -1.000000e+30 : f32
    %53 = vector.broadcast %cst_27 : f32 to vector<16x16xf32>
    %54 = arith.select %22, %53, %52 : vector<16x16xi1>, vector<16x16xf32>
    %cst_28 = arith.constant dense<0xFF800000> : vector<16xf32>
    %55 = vector.multi_reduction <maximumf>, %54, %cst_28 [1] : vector<16x16xf32> to vector<16xf32>
    %56 = vector.shape_cast %55 : vector<16xf32> to vector<16x1xf32>
    %57 = vector.broadcast %56 : vector<16x1xf32> to vector<16x16xf32>
    %58 = arith.subf %54, %57 : vector<16x16xf32>
    %59 = math.exp %58 : vector<16x16xf32>
    %cst_29 = arith.constant dense<0.000000e+00> : vector<16xf32>
    %60 = vector.multi_reduction <add>, %59, %cst_29 [1] : vector<16x16xf32> to vector<16xf32>
    %61 = vector.shape_cast %60 : vector<16xf32> to vector<16x1xf32>
    %62 = tpu.reciprocal %61 {approx = true} : vector<16x1xf32> -> vector<16x1xf32>
    %63 = vector.broadcast %62 : vector<16x1xf32> to vector<16x16xf32>
    %64 = arith.mulf %59, %63 : vector<16x16xf32>
    %cst_30 = arith.constant dense<0.000000e+00> : vector<16x16xf32>
    %65 = tpu.matmul %64, %49, %cst_30 {dimension_numbers = #tpu.dot_dimension_numbers<[1], [0], [0], [1], [0, 0, 1, 1], [], []>} : vector<16x16xf32>, vector<16x16xf32>, vector<16x16xf32> -> vector<16x16xf32>
    %66 = vector.extract_strided_slice %46 {offsets = [0, 0], sizes = [16, 32], strides = [1, 1]} : vector<32x32xf32> to vector<16x32xf32>
    %cst_31 = arith.constant dense<0.000000e+00> : vector<16x32xf32>
    %67 = tpu.matmul %65, %66, %cst_31 {dimension_numbers = #tpu.dot_dimension_numbers<[1], [0], [0], [1], [0, 0, 1, 1], [], []>} : vector<16x16xf32>, vector<16x32xf32>, vector<16x32xf32> -> vector<16x32xf32>
    %68 = vector.extract_strided_slice %42 {offsets = [0, 16], sizes = [16, 16], strides = [1, 1]} : vector<16x32xf32> to vector<16x16xf32>
    %69 = vector.extract_strided_slice %43 {offsets = [0, 16], sizes = [16, 16], strides = [1, 1]} : vector<16x32xf32> to vector<16x16xf32>
    %70 = vector.extract_strided_slice %44 {offsets = [0, 16], sizes = [16, 16], strides = [1, 1]} : vector<16x32xf32> to vector<16x16xf32>
    %cst_32 = arith.constant dense<0.000000e+00> : vector<16x16xf32>
    %71 = tpu.matmul %68, %69, %cst_32 {dimension_numbers = #tpu.dot_dimension_numbers<[1], [1], [0], [0], [0, 0, 1, 0], [], []>} : vector<16x16xf32>, vector<16x16xf32>, vector<16x16xf32> -> vector<16x16xf32>
    %cst_33 = arith.constant 2.500000e-01 : f32
    %72 = vector.broadcast %cst_33 : f32 to vector<16x16xf32>
    %73 = arith.mulf %71, %72 : vector<16x16xf32>
    %cst_34 = arith.constant -1.000000e+30 : f32
    %74 = vector.broadcast %cst_34 : f32 to vector<16x16xf32>
    %75 = arith.select %22, %74, %73 : vector<16x16xi1>, vector<16x16xf32>
    %cst_35 = arith.constant dense<0xFF800000> : vector<16xf32>
    %76 = vector.multi_reduction <maximumf>, %75, %cst_35 [1] : vector<16x16xf32> to vector<16xf32>
    %77 = vector.shape_cast %76 : vector<16xf32> to vector<16x1xf32>
    %78 = vector.broadcast %77 : vector<16x1xf32> to vector<16x16xf32>
    %79 = arith.subf %75, %78 : vector<16x16xf32>
    %80 = math.exp %79 : vector<16x16xf32>
    %cst_36 = arith.constant dense<0.000000e+00> : vector<16xf32>
    %81 = vector.multi_reduction <add>, %80, %cst_36 [1] : vector<16x16xf32> to vector<16xf32>
    %82 = vector.shape_cast %81 : vector<16xf32> to vector<16x1xf32>
    %83 = tpu.reciprocal %82 {approx = true} : vector<16x1xf32> -> vector<16x1xf32>
    %84 = vector.broadcast %83 : vector<16x1xf32> to vector<16x16xf32>
    %85 = arith.mulf %80, %84 : vector<16x16xf32>
    %cst_37 = arith.constant dense<0.000000e+00> : vector<16x16xf32>
    %86 = tpu.matmul %85, %70, %cst_37 {dimension_numbers = #tpu.dot_dimension_numbers<[1], [0], [0], [1], [0, 0, 1, 1], [], []>} : vector<16x16xf32>, vector<16x16xf32>, vector<16x16xf32> -> vector<16x16xf32>
    %87 = vector.extract_strided_slice %46 {offsets = [16, 0], sizes = [16, 32], strides = [1, 1]} : vector<32x32xf32> to vector<16x32xf32>
    %cst_38 = arith.constant dense<0.000000e+00> : vector<16x32xf32>
    %88 = tpu.matmul %86, %87, %cst_38 {dimension_numbers = #tpu.dot_dimension_numbers<[1], [0], [0], [1], [0, 0, 1, 1], [], []>} : vector<16x16xf32>, vector<16x32xf32>, vector<16x32xf32> -> vector<16x32xf32>
    %89 = arith.addf %67, %88 : vector<16x32xf32>
    %90 = vector.extract_strided_slice %33 {offsets = [0, 0], sizes = [1, 32], strides = [1, 1]} : vector<9x32xf32> to vector<1x32xf32>
    %91 = vector.broadcast %90 : vector<1x32xf32> to vector<16x32xf32>
    %92 = arith.addf %89, %91 : vector<16x32xf32>
    %93 = arith.addf %92, %1 : vector<16x32xf32>
    %94 = vector.extract_strided_slice %33 {offsets = [1, 0], sizes = [1, 32], strides = [1, 1]} : vector<9x32xf32> to vector<1x32xf32>
    %95 = vector.extract_strided_slice %33 {offsets = [2, 0], sizes = [1, 32], strides = [1, 1]} : vector<9x32xf32> to vector<1x32xf32>
    %cst_39 = arith.constant dense<0.000000e+00> : vector<16xf32>
    %96 = vector.multi_reduction <add>, %93, %cst_39 [1] : vector<16x32xf32> to vector<16xf32>
    %97 = vector.shape_cast %96 : vector<16xf32> to vector<16x1xf32>
    %cst_40 = arith.constant 3.200000e+01 : f32
    %98 = vector.broadcast %cst_40 : f32 to vector<16x1xf32>
    %99 = arith.divf %97, %98 : vector<16x1xf32>
    %100 = vector.broadcast %99 : vector<16x1xf32> to vector<16x32xf32>
    %101 = arith.subf %93, %100 : vector<16x32xf32>
    %102 = arith.mulf %101, %101 : vector<16x32xf32>
    %cst_41 = arith.constant dense<0.000000e+00> : vector<16xf32>
    %103 = vector.multi_reduction <add>, %102, %cst_41 [1] : vector<16x32xf32> to vector<16xf32>
    %104 = vector.shape_cast %103 : vector<16xf32> to vector<16x1xf32>
    %cst_42 = arith.constant 3.200000e+01 : f32
    %105 = vector.broadcast %cst_42 : f32 to vector<16x1xf32>
    %106 = arith.divf %104, %105 : vector<16x1xf32>
    %cst_43 = arith.constant 9.99999974E-6 : f32
    %107 = vector.broadcast %cst_43 : f32 to vector<16x1xf32>
    %108 = arith.addf %106, %107 : vector<16x1xf32>
    %109 = math.rsqrt %108 : vector<16x1xf32>
    %110 = vector.broadcast %109 : vector<16x1xf32> to vector<16x32xf32>
    %111 = arith.mulf %101, %110 : vector<16x32xf32>
    %112 = vector.broadcast %94 : vector<1x32xf32> to vector<16x32xf32>
    %113 = arith.mulf %111, %112 : vector<16x32xf32>
    %114 = vector.broadcast %95 : vector<1x32xf32> to vector<16x32xf32>
    %115 = arith.addf %113, %114 : vector<16x32xf32>
    %116 = vector.broadcast %6 : vector<16x1xf32> to vector<16x32xf32>
    %117 = arith.mulf %115, %116 : vector<16x32xf32>
    %c0_44 = arith.constant 0 : index
    %c0_45 = arith.constant 0 : index
    %c0_46 = arith.constant 0 : index
    %118 = vector.load %arg7[%c0_44, %c0_45, %c0_46] : memref<2x32x32xf32, #tpu.memory_space<vmem>>, vector<1x32x32xf32>
    %119 = vector.shape_cast %118 : vector<1x32x32xf32> to vector<32x32xf32>
    %cst_47 = arith.constant dense<0.000000e+00> : vector<16x32xf32>
    %120 = tpu.matmul %117, %119, %cst_47 {dimension_numbers = #tpu.dot_dimension_numbers<[1], [0], [0], [1], [0, 0, 1, 1], [], []>} : vector<16x32xf32>, vector<32x32xf32>, vector<16x32xf32> -> vector<16x32xf32>
    %121 = vector.extract_strided_slice %35 {offsets = [1, 0], sizes = [1, 32], strides = [1, 1]} : vector<4x96xf32> to vector<1x32xf32>
    %122 = vector.broadcast %121 : vector<1x32xf32> to vector<16x32xf32>
    %123 = arith.addf %120, %122 : vector<16x32xf32>
    %c0_48 = arith.constant 0 : index
    %c0_49 = arith.constant 0 : index
    %c0_50 = arith.constant 0 : index
    %124 = vector.load %arg8[%c0_48, %c0_49, %c0_50] : memref<2x32x64xf32, #tpu.memory_space<vmem>>, vector<1x32x64xf32>
    %125 = vector.shape_cast %124 : vector<1x32x64xf32> to vector<32x64xf32>
    %cst_51 = arith.constant dense<0.000000e+00> : vector<16x64xf32>
    %126 = tpu.matmul %3, %125, %cst_51 {dimension_numbers = #tpu.dot_dimension_numbers<[1], [0], [0], [1], [0, 0, 1, 1], [], []>} : vector<16x32xf32>, vector<32x64xf32>, vector<16x64xf32> -> vector<16x64xf32>
    %127 = vector.extract_strided_slice %35 {offsets = [2, 0], sizes = [1, 64], strides = [1, 1]} : vector<4x96xf32> to vector<1x64xf32>
    %128 = vector.broadcast %127 : vector<1x64xf32> to vector<16x64xf32>
    %129 = arith.addf %126, %128 : vector<16x64xf32>
    %130 = vector.extract_strided_slice %129 {offsets = [0, 0], sizes = [16, 32], strides = [1, 1]} : vector<16x64xf32> to vector<16x32xf32>
    %131 = vector.extract_strided_slice %129 {offsets = [0, 32], sizes = [16, 32], strides = [1, 1]} : vector<16x64xf32> to vector<16x32xf32>
    %c0_52 = arith.constant 0 : index
    %c0_53 = arith.constant 0 : index
    %c0_54 = arith.constant 0 : index
    %132 = vector.load %arg9[%c0_52, %c0_53, %c0_54] : memref<2x32x32xf32, #tpu.memory_space<vmem>>, vector<1x32x32xf32>
    %133 = vector.shape_cast %132 : vector<1x32x32xf32> to vector<32x32xf32>
    %134 = vector.extract_strided_slice %123 {offsets = [0, 0], sizes = [16, 16], strides = [1, 1]} : vector<16x32xf32> to vector<16x16xf32>
    %135 = vector.extract_strided_slice %130 {offsets = [0, 0], sizes = [16, 16], strides = [1, 1]} : vector<16x32xf32> to vector<16x16xf32>
    %136 = vector.extract_strided_slice %131 {offsets = [0, 0], sizes = [16, 16], strides = [1, 1]} : vector<16x32xf32> to vector<16x16xf32>
    %cst_55 = arith.constant dense<0.000000e+00> : vector<16x16xf32>
    %137 = tpu.matmul %134, %135, %cst_55 {dimension_numbers = #tpu.dot_dimension_numbers<[1], [1], [0], [0], [0, 0, 1, 0], [], []>} : vector<16x16xf32>, vector<16x16xf32>, vector<16x16xf32> -> vector<16x16xf32>
    %cst_56 = arith.constant 2.500000e-01 : f32
    %138 = vector.broadcast %cst_56 : f32 to vector<16x16xf32>
    %139 = arith.mulf %137, %138 : vector<16x16xf32>
    %cst_57 = arith.constant -1.000000e+30 : f32
    %140 = vector.broadcast %cst_57 : f32 to vector<16x16xf32>
    %141 = arith.select %31, %140, %139 : vector<16x16xi1>, vector<16x16xf32>
    %cst_58 = arith.constant dense<0xFF800000> : vector<16xf32>
    %142 = vector.multi_reduction <maximumf>, %141, %cst_58 [1] : vector<16x16xf32> to vector<16xf32>
    %143 = vector.shape_cast %142 : vector<16xf32> to vector<16x1xf32>
    %144 = vector.broadcast %143 : vector<16x1xf32> to vector<16x16xf32>
    %145 = arith.subf %141, %144 : vector<16x16xf32>
    %146 = math.exp %145 : vector<16x16xf32>
    %cst_59 = arith.constant dense<0.000000e+00> : vector<16xf32>
    %147 = vector.multi_reduction <add>, %146, %cst_59 [1] : vector<16x16xf32> to vector<16xf32>
    %148 = vector.shape_cast %147 : vector<16xf32> to vector<16x1xf32>
    %149 = tpu.reciprocal %148 {approx = true} : vector<16x1xf32> -> vector<16x1xf32>
    %150 = vector.broadcast %149 : vector<16x1xf32> to vector<16x16xf32>
    %151 = arith.mulf %146, %150 : vector<16x16xf32>
    %cst_60 = arith.constant dense<0.000000e+00> : vector<16x16xf32>
    %152 = tpu.matmul %151, %136, %cst_60 {dimension_numbers = #tpu.dot_dimension_numbers<[1], [0], [0], [1], [0, 0, 1, 1], [], []>} : vector<16x16xf32>, vector<16x16xf32>, vector<16x16xf32> -> vector<16x16xf32>
    %153 = vector.extract_strided_slice %133 {offsets = [0, 0], sizes = [16, 32], strides = [1, 1]} : vector<32x32xf32> to vector<16x32xf32>
    %cst_61 = arith.constant dense<0.000000e+00> : vector<16x32xf32>
    %154 = tpu.matmul %152, %153, %cst_61 {dimension_numbers = #tpu.dot_dimension_numbers<[1], [0], [0], [1], [0, 0, 1, 1], [], []>} : vector<16x16xf32>, vector<16x32xf32>, vector<16x32xf32> -> vector<16x32xf32>
    %155 = vector.extract_strided_slice %123 {offsets = [0, 16], sizes = [16, 16], strides = [1, 1]} : vector<16x32xf32> to vector<16x16xf32>
    %156 = vector.extract_strided_slice %130 {offsets = [0, 16], sizes = [16, 16], strides = [1, 1]} : vector<16x32xf32> to vector<16x16xf32>
    %157 = vector.extract_strided_slice %131 {offsets = [0, 16], sizes = [16, 16], strides = [1, 1]} : vector<16x32xf32> to vector<16x16xf32>
    %cst_62 = arith.constant dense<0.000000e+00> : vector<16x16xf32>
    %158 = tpu.matmul %155, %156, %cst_62 {dimension_numbers = #tpu.dot_dimension_numbers<[1], [1], [0], [0], [0, 0, 1, 0], [], []>} : vector<16x16xf32>, vector<16x16xf32>, vector<16x16xf32> -> vector<16x16xf32>
    %cst_63 = arith.constant 2.500000e-01 : f32
    %159 = vector.broadcast %cst_63 : f32 to vector<16x16xf32>
    %160 = arith.mulf %158, %159 : vector<16x16xf32>
    %cst_64 = arith.constant -1.000000e+30 : f32
    %161 = vector.broadcast %cst_64 : f32 to vector<16x16xf32>
    %162 = arith.select %31, %161, %160 : vector<16x16xi1>, vector<16x16xf32>
    %cst_65 = arith.constant dense<0xFF800000> : vector<16xf32>
    %163 = vector.multi_reduction <maximumf>, %162, %cst_65 [1] : vector<16x16xf32> to vector<16xf32>
    %164 = vector.shape_cast %163 : vector<16xf32> to vector<16x1xf32>
    %165 = vector.broadcast %164 : vector<16x1xf32> to vector<16x16xf32>
    %166 = arith.subf %162, %165 : vector<16x16xf32>
    %167 = math.exp %166 : vector<16x16xf32>
    %cst_66 = arith.constant dense<0.000000e+00> : vector<16xf32>
    %168 = vector.multi_reduction <add>, %167, %cst_66 [1] : vector<16x16xf32> to vector<16xf32>
    %169 = vector.shape_cast %168 : vector<16xf32> to vector<16x1xf32>
    %170 = tpu.reciprocal %169 {approx = true} : vector<16x1xf32> -> vector<16x1xf32>
    %171 = vector.broadcast %170 : vector<16x1xf32> to vector<16x16xf32>
    %172 = arith.mulf %167, %171 : vector<16x16xf32>
    %cst_67 = arith.constant dense<0.000000e+00> : vector<16x16xf32>
    %173 = tpu.matmul %172, %157, %cst_67 {dimension_numbers = #tpu.dot_dimension_numbers<[1], [0], [0], [1], [0, 0, 1, 1], [], []>} : vector<16x16xf32>, vector<16x16xf32>, vector<16x16xf32> -> vector<16x16xf32>
    %174 = vector.extract_strided_slice %133 {offsets = [16, 0], sizes = [16, 32], strides = [1, 1]} : vector<32x32xf32> to vector<16x32xf32>
    %cst_68 = arith.constant dense<0.000000e+00> : vector<16x32xf32>
    %175 = tpu.matmul %173, %174, %cst_68 {dimension_numbers = #tpu.dot_dimension_numbers<[1], [0], [0], [1], [0, 0, 1, 1], [], []>} : vector<16x16xf32>, vector<16x32xf32>, vector<16x32xf32> -> vector<16x32xf32>
    %176 = arith.addf %154, %175 : vector<16x32xf32>
    %177 = vector.extract_strided_slice %33 {offsets = [3, 0], sizes = [1, 32], strides = [1, 1]} : vector<9x32xf32> to vector<1x32xf32>
    %178 = vector.broadcast %177 : vector<1x32xf32> to vector<16x32xf32>
    %179 = arith.addf %176, %178 : vector<16x32xf32>
    %180 = arith.addf %179, %117 : vector<16x32xf32>
    %181 = vector.extract_strided_slice %33 {offsets = [4, 0], sizes = [1, 32], strides = [1, 1]} : vector<9x32xf32> to vector<1x32xf32>
    %182 = vector.extract_strided_slice %33 {offsets = [5, 0], sizes = [1, 32], strides = [1, 1]} : vector<9x32xf32> to vector<1x32xf32>
    %cst_69 = arith.constant dense<0.000000e+00> : vector<16xf32>
    %183 = vector.multi_reduction <add>, %180, %cst_69 [1] : vector<16x32xf32> to vector<16xf32>
    %184 = vector.shape_cast %183 : vector<16xf32> to vector<16x1xf32>
    %cst_70 = arith.constant 3.200000e+01 : f32
    %185 = vector.broadcast %cst_70 : f32 to vector<16x1xf32>
    %186 = arith.divf %184, %185 : vector<16x1xf32>
    %187 = vector.broadcast %186 : vector<16x1xf32> to vector<16x32xf32>
    %188 = arith.subf %180, %187 : vector<16x32xf32>
    %189 = arith.mulf %188, %188 : vector<16x32xf32>
    %cst_71 = arith.constant dense<0.000000e+00> : vector<16xf32>
    %190 = vector.multi_reduction <add>, %189, %cst_71 [1] : vector<16x32xf32> to vector<16xf32>
    %191 = vector.shape_cast %190 : vector<16xf32> to vector<16x1xf32>
    %cst_72 = arith.constant 3.200000e+01 : f32
    %192 = vector.broadcast %cst_72 : f32 to vector<16x1xf32>
    %193 = arith.divf %191, %192 : vector<16x1xf32>
    %cst_73 = arith.constant 9.99999974E-6 : f32
    %194 = vector.broadcast %cst_73 : f32 to vector<16x1xf32>
    %195 = arith.addf %193, %194 : vector<16x1xf32>
    %196 = math.rsqrt %195 : vector<16x1xf32>
    %197 = vector.broadcast %196 : vector<16x1xf32> to vector<16x32xf32>
    %198 = arith.mulf %188, %197 : vector<16x32xf32>
    %199 = vector.broadcast %181 : vector<1x32xf32> to vector<16x32xf32>
    %200 = arith.mulf %198, %199 : vector<16x32xf32>
    %201 = vector.broadcast %182 : vector<1x32xf32> to vector<16x32xf32>
    %202 = arith.addf %200, %201 : vector<16x32xf32>
    %203 = vector.broadcast %6 : vector<16x1xf32> to vector<16x32xf32>
    %204 = arith.mulf %202, %203 : vector<16x32xf32>
    %c0_74 = arith.constant 0 : index
    %c0_75 = arith.constant 0 : index
    %c0_76 = arith.constant 0 : index
    %205 = vector.load %arg10[%c0_74, %c0_75, %c0_76] : memref<2x32x64xf32, #tpu.memory_space<vmem>>, vector<1x32x64xf32>
    %206 = vector.shape_cast %205 : vector<1x32x64xf32> to vector<32x64xf32>
    %cst_77 = arith.constant dense<0.000000e+00> : vector<16x64xf32>
    %207 = tpu.matmul %204, %206, %cst_77 {dimension_numbers = #tpu.dot_dimension_numbers<[1], [0], [0], [1], [0, 0, 1, 1], [], []>} : vector<16x32xf32>, vector<32x64xf32>, vector<16x64xf32> -> vector<16x64xf32>
    %208 = vector.extract_strided_slice %35 {offsets = [3, 0], sizes = [1, 64], strides = [1, 1]} : vector<4x96xf32> to vector<1x64xf32>
    %209 = vector.broadcast %208 : vector<1x64xf32> to vector<16x64xf32>
    %210 = arith.addf %207, %209 : vector<16x64xf32>
    %cst_78 = arith.constant 0.000000e+00 : f32
    %211 = vector.broadcast %cst_78 : f32 to vector<16x64xf32>
    %212 = arith.maximumf %210, %211 : vector<16x64xf32>
    %c0_79 = arith.constant 0 : index
    %c0_80 = arith.constant 0 : index
    %c0_81 = arith.constant 0 : index
    %213 = vector.load %arg11[%c0_79, %c0_80, %c0_81] : memref<2x64x32xf32, #tpu.memory_space<vmem>>, vector<1x64x32xf32>
    %214 = vector.shape_cast %213 : vector<1x64x32xf32> to vector<64x32xf32>
    %cst_82 = arith.constant dense<0.000000e+00> : vector<16x32xf32>
    %215 = tpu.matmul %212, %214, %cst_82 {dimension_numbers = #tpu.dot_dimension_numbers<[1], [0], [0], [1], [0, 0, 1, 1], [], []>} : vector<16x64xf32>, vector<64x32xf32>, vector<16x32xf32> -> vector<16x32xf32>
    %216 = vector.extract_strided_slice %33 {offsets = [6, 0], sizes = [1, 32], strides = [1, 1]} : vector<9x32xf32> to vector<1x32xf32>
    %217 = vector.broadcast %216 : vector<1x32xf32> to vector<16x32xf32>
    %218 = arith.addf %215, %217 : vector<16x32xf32>
    %219 = arith.addf %218, %204 : vector<16x32xf32>
    %220 = vector.extract_strided_slice %33 {offsets = [7, 0], sizes = [1, 32], strides = [1, 1]} : vector<9x32xf32> to vector<1x32xf32>
    %221 = vector.extract_strided_slice %33 {offsets = [8, 0], sizes = [1, 32], strides = [1, 1]} : vector<9x32xf32> to vector<1x32xf32>
    %cst_83 = arith.constant dense<0.000000e+00> : vector<16xf32>
    %222 = vector.multi_reduction <add>, %219, %cst_83 [1] : vector<16x32xf32> to vector<16xf32>
    %223 = vector.shape_cast %222 : vector<16xf32> to vector<16x1xf32>
    %cst_84 = arith.constant 3.200000e+01 : f32
    %224 = vector.broadcast %cst_84 : f32 to vector<16x1xf32>
    %225 = arith.divf %223, %224 : vector<16x1xf32>
    %226 = vector.broadcast %225 : vector<16x1xf32> to vector<16x32xf32>
    %227 = arith.subf %219, %226 : vector<16x32xf32>
    %228 = arith.mulf %227, %227 : vector<16x32xf32>
    %cst_85 = arith.constant dense<0.000000e+00> : vector<16xf32>
    %229 = vector.multi_reduction <add>, %228, %cst_85 [1] : vector<16x32xf32> to vector<16xf32>
    %230 = vector.shape_cast %229 : vector<16xf32> to vector<16x1xf32>
    %cst_86 = arith.constant 3.200000e+01 : f32
    %231 = vector.broadcast %cst_86 : f32 to vector<16x1xf32>
    %232 = arith.divf %230, %231 : vector<16x1xf32>
    %cst_87 = arith.constant 9.99999974E-6 : f32
    %233 = vector.broadcast %cst_87 : f32 to vector<16x1xf32>
    %234 = arith.addf %232, %233 : vector<16x1xf32>
    %235 = math.rsqrt %234 : vector<16x1xf32>
    %236 = vector.broadcast %235 : vector<16x1xf32> to vector<16x32xf32>
    %237 = arith.mulf %227, %236 : vector<16x32xf32>
    %238 = vector.broadcast %220 : vector<1x32xf32> to vector<16x32xf32>
    %239 = arith.mulf %237, %238 : vector<16x32xf32>
    %240 = vector.broadcast %221 : vector<1x32xf32> to vector<16x32xf32>
    %241 = arith.addf %239, %240 : vector<16x32xf32>
    %242 = vector.broadcast %6 : vector<16x1xf32> to vector<16x32xf32>
    %243 = arith.mulf %241, %242 : vector<16x32xf32>
    %c1 = arith.constant 1 : index
    %c0_88 = arith.constant 0 : index
    %c0_89 = arith.constant 0 : index
    %244 = vector.load %arg12[%c1, %c0_88, %c0_89] : memref<2x9x32xf32, #tpu.memory_space<vmem>>, vector<1x9x32xf32>
    %245 = vector.shape_cast %244 : vector<1x9x32xf32> to vector<9x32xf32>
    %c1_90 = arith.constant 1 : index
    %c0_91 = arith.constant 0 : index
    %c0_92 = arith.constant 0 : index
    %246 = vector.load %arg13[%c1_90, %c0_91, %c0_92] : memref<2x4x96xf32, #tpu.memory_space<vmem>>, vector<1x4x96xf32>
    %247 = vector.shape_cast %246 : vector<1x4x96xf32> to vector<4x96xf32>
    %c1_93 = arith.constant 1 : index
    %c0_94 = arith.constant 0 : index
    %c0_95 = arith.constant 0 : index
    %248 = vector.load %arg5[%c1_93, %c0_94, %c0_95] : memref<2x32x96xf32, #tpu.memory_space<vmem>>, vector<1x32x96xf32>
    %249 = vector.shape_cast %248 : vector<1x32x96xf32> to vector<32x96xf32>
    %cst_96 = arith.constant dense<0.000000e+00> : vector<16x96xf32>
    %250 = tpu.matmul %243, %249, %cst_96 {dimension_numbers = #tpu.dot_dimension_numbers<[1], [0], [0], [1], [0, 0, 1, 1], [], []>} : vector<16x32xf32>, vector<32x96xf32>, vector<16x96xf32> -> vector<16x96xf32>
    %251 = vector.extract_strided_slice %247 {offsets = [0, 0], sizes = [1, 96], strides = [1, 1]} : vector<4x96xf32> to vector<1x96xf32>
    %252 = vector.broadcast %251 : vector<1x96xf32> to vector<16x96xf32>
    %253 = arith.addf %250, %252 : vector<16x96xf32>
    %254 = vector.extract_strided_slice %253 {offsets = [0, 0], sizes = [16, 32], strides = [1, 1]} : vector<16x96xf32> to vector<16x32xf32>
    %255 = vector.extract_strided_slice %253 {offsets = [0, 32], sizes = [16, 32], strides = [1, 1]} : vector<16x96xf32> to vector<16x32xf32>
    %256 = vector.extract_strided_slice %253 {offsets = [0, 64], sizes = [16, 32], strides = [1, 1]} : vector<16x96xf32> to vector<16x32xf32>
    %c1_97 = arith.constant 1 : index
    %c0_98 = arith.constant 0 : index
    %c0_99 = arith.constant 0 : index
    %257 = vector.load %arg6[%c1_97, %c0_98, %c0_99] : memref<2x32x32xf32, #tpu.memory_space<vmem>>, vector<1x32x32xf32>
    %258 = vector.shape_cast %257 : vector<1x32x32xf32> to vector<32x32xf32>
    %259 = vector.extract_strided_slice %254 {offsets = [0, 0], sizes = [16, 16], strides = [1, 1]} : vector<16x32xf32> to vector<16x16xf32>
    %260 = vector.extract_strided_slice %255 {offsets = [0, 0], sizes = [16, 16], strides = [1, 1]} : vector<16x32xf32> to vector<16x16xf32>
    %261 = vector.extract_strided_slice %256 {offsets = [0, 0], sizes = [16, 16], strides = [1, 1]} : vector<16x32xf32> to vector<16x16xf32>
    %cst_100 = arith.constant dense<0.000000e+00> : vector<16x16xf32>
    %262 = tpu.matmul %259, %260, %cst_100 {dimension_numbers = #tpu.dot_dimension_numbers<[1], [1], [0], [0], [0, 0, 1, 0], [], []>} : vector<16x16xf32>, vector<16x16xf32>, vector<16x16xf32> -> vector<16x16xf32>
    %cst_101 = arith.constant 2.500000e-01 : f32
    %263 = vector.broadcast %cst_101 : f32 to vector<16x16xf32>
    %264 = arith.mulf %262, %263 : vector<16x16xf32>
    %cst_102 = arith.constant -1.000000e+30 : f32
    %265 = vector.broadcast %cst_102 : f32 to vector<16x16xf32>
    %266 = arith.select %22, %265, %264 : vector<16x16xi1>, vector<16x16xf32>
    %cst_103 = arith.constant dense<0xFF800000> : vector<16xf32>
    %267 = vector.multi_reduction <maximumf>, %266, %cst_103 [1] : vector<16x16xf32> to vector<16xf32>
    %268 = vector.shape_cast %267 : vector<16xf32> to vector<16x1xf32>
    %269 = vector.broadcast %268 : vector<16x1xf32> to vector<16x16xf32>
    %270 = arith.subf %266, %269 : vector<16x16xf32>
    %271 = math.exp %270 : vector<16x16xf32>
    %cst_104 = arith.constant dense<0.000000e+00> : vector<16xf32>
    %272 = vector.multi_reduction <add>, %271, %cst_104 [1] : vector<16x16xf32> to vector<16xf32>
    %273 = vector.shape_cast %272 : vector<16xf32> to vector<16x1xf32>
    %274 = tpu.reciprocal %273 {approx = true} : vector<16x1xf32> -> vector<16x1xf32>
    %275 = vector.broadcast %274 : vector<16x1xf32> to vector<16x16xf32>
    %276 = arith.mulf %271, %275 : vector<16x16xf32>
    %cst_105 = arith.constant dense<0.000000e+00> : vector<16x16xf32>
    %277 = tpu.matmul %276, %261, %cst_105 {dimension_numbers = #tpu.dot_dimension_numbers<[1], [0], [0], [1], [0, 0, 1, 1], [], []>} : vector<16x16xf32>, vector<16x16xf32>, vector<16x16xf32> -> vector<16x16xf32>
    %278 = vector.extract_strided_slice %258 {offsets = [0, 0], sizes = [16, 32], strides = [1, 1]} : vector<32x32xf32> to vector<16x32xf32>
    %cst_106 = arith.constant dense<0.000000e+00> : vector<16x32xf32>
    %279 = tpu.matmul %277, %278, %cst_106 {dimension_numbers = #tpu.dot_dimension_numbers<[1], [0], [0], [1], [0, 0, 1, 1], [], []>} : vector<16x16xf32>, vector<16x32xf32>, vector<16x32xf32> -> vector<16x32xf32>
    %280 = vector.extract_strided_slice %254 {offsets = [0, 16], sizes = [16, 16], strides = [1, 1]} : vector<16x32xf32> to vector<16x16xf32>
    %281 = vector.extract_strided_slice %255 {offsets = [0, 16], sizes = [16, 16], strides = [1, 1]} : vector<16x32xf32> to vector<16x16xf32>
    %282 = vector.extract_strided_slice %256 {offsets = [0, 16], sizes = [16, 16], strides = [1, 1]} : vector<16x32xf32> to vector<16x16xf32>
    %cst_107 = arith.constant dense<0.000000e+00> : vector<16x16xf32>
    %283 = tpu.matmul %280, %281, %cst_107 {dimension_numbers = #tpu.dot_dimension_numbers<[1], [1], [0], [0], [0, 0, 1, 0], [], []>} : vector<16x16xf32>, vector<16x16xf32>, vector<16x16xf32> -> vector<16x16xf32>
    %cst_108 = arith.constant 2.500000e-01 : f32
    %284 = vector.broadcast %cst_108 : f32 to vector<16x16xf32>
    %285 = arith.mulf %283, %284 : vector<16x16xf32>
    %cst_109 = arith.constant -1.000000e+30 : f32
    %286 = vector.broadcast %cst_109 : f32 to vector<16x16xf32>
    %287 = arith.select %22, %286, %285 : vector<16x16xi1>, vector<16x16xf32>
    %cst_110 = arith.constant dense<0xFF800000> : vector<16xf32>
    %288 = vector.multi_reduction <maximumf>, %287, %cst_110 [1] : vector<16x16xf32> to vector<16xf32>
    %289 = vector.shape_cast %288 : vector<16xf32> to vector<16x1xf32>
    %290 = vector.broadcast %289 : vector<16x1xf32> to vector<16x16xf32>
    %291 = arith.subf %287, %290 : vector<16x16xf32>
    %292 = math.exp %291 : vector<16x16xf32>
    %cst_111 = arith.constant dense<0.000000e+00> : vector<16xf32>
    %293 = vector.multi_reduction <add>, %292, %cst_111 [1] : vector<16x16xf32> to vector<16xf32>
    %294 = vector.shape_cast %293 : vector<16xf32> to vector<16x1xf32>
    %295 = tpu.reciprocal %294 {approx = true} : vector<16x1xf32> -> vector<16x1xf32>
    %296 = vector.broadcast %295 : vector<16x1xf32> to vector<16x16xf32>
    %297 = arith.mulf %292, %296 : vector<16x16xf32>
    %cst_112 = arith.constant dense<0.000000e+00> : vector<16x16xf32>
    %298 = tpu.matmul %297, %282, %cst_112 {dimension_numbers = #tpu.dot_dimension_numbers<[1], [0], [0], [1], [0, 0, 1, 1], [], []>} : vector<16x16xf32>, vector<16x16xf32>, vector<16x16xf32> -> vector<16x16xf32>
    %299 = vector.extract_strided_slice %258 {offsets = [16, 0], sizes = [16, 32], strides = [1, 1]} : vector<32x32xf32> to vector<16x32xf32>
    %cst_113 = arith.constant dense<0.000000e+00> : vector<16x32xf32>
    %300 = tpu.matmul %298, %299, %cst_113 {dimension_numbers = #tpu.dot_dimension_numbers<[1], [0], [0], [1], [0, 0, 1, 1], [], []>} : vector<16x16xf32>, vector<16x32xf32>, vector<16x32xf32> -> vector<16x32xf32>
    %301 = arith.addf %279, %300 : vector<16x32xf32>
    %302 = vector.extract_strided_slice %245 {offsets = [0, 0], sizes = [1, 32], strides = [1, 1]} : vector<9x32xf32> to vector<1x32xf32>
    %303 = vector.broadcast %302 : vector<1x32xf32> to vector<16x32xf32>
    %304 = arith.addf %301, %303 : vector<16x32xf32>
    %305 = arith.addf %304, %243 : vector<16x32xf32>
    %306 = vector.extract_strided_slice %245 {offsets = [1, 0], sizes = [1, 32], strides = [1, 1]} : vector<9x32xf32> to vector<1x32xf32>
    %307 = vector.extract_strided_slice %245 {offsets = [2, 0], sizes = [1, 32], strides = [1, 1]} : vector<9x32xf32> to vector<1x32xf32>
    %cst_114 = arith.constant dense<0.000000e+00> : vector<16xf32>
    %308 = vector.multi_reduction <add>, %305, %cst_114 [1] : vector<16x32xf32> to vector<16xf32>
    %309 = vector.shape_cast %308 : vector<16xf32> to vector<16x1xf32>
    %cst_115 = arith.constant 3.200000e+01 : f32
    %310 = vector.broadcast %cst_115 : f32 to vector<16x1xf32>
    %311 = arith.divf %309, %310 : vector<16x1xf32>
    %312 = vector.broadcast %311 : vector<16x1xf32> to vector<16x32xf32>
    %313 = arith.subf %305, %312 : vector<16x32xf32>
    %314 = arith.mulf %313, %313 : vector<16x32xf32>
    %cst_116 = arith.constant dense<0.000000e+00> : vector<16xf32>
    %315 = vector.multi_reduction <add>, %314, %cst_116 [1] : vector<16x32xf32> to vector<16xf32>
    %316 = vector.shape_cast %315 : vector<16xf32> to vector<16x1xf32>
    %cst_117 = arith.constant 3.200000e+01 : f32
    %317 = vector.broadcast %cst_117 : f32 to vector<16x1xf32>
    %318 = arith.divf %316, %317 : vector<16x1xf32>
    %cst_118 = arith.constant 9.99999974E-6 : f32
    %319 = vector.broadcast %cst_118 : f32 to vector<16x1xf32>
    %320 = arith.addf %318, %319 : vector<16x1xf32>
    %321 = math.rsqrt %320 : vector<16x1xf32>
    %322 = vector.broadcast %321 : vector<16x1xf32> to vector<16x32xf32>
    %323 = arith.mulf %313, %322 : vector<16x32xf32>
    %324 = vector.broadcast %306 : vector<1x32xf32> to vector<16x32xf32>
    %325 = arith.mulf %323, %324 : vector<16x32xf32>
    %326 = vector.broadcast %307 : vector<1x32xf32> to vector<16x32xf32>
    %327 = arith.addf %325, %326 : vector<16x32xf32>
    %328 = vector.broadcast %6 : vector<16x1xf32> to vector<16x32xf32>
    %329 = arith.mulf %327, %328 : vector<16x32xf32>
    %c1_119 = arith.constant 1 : index
    %c0_120 = arith.constant 0 : index
    %c0_121 = arith.constant 0 : index
    %330 = vector.load %arg7[%c1_119, %c0_120, %c0_121] : memref<2x32x32xf32, #tpu.memory_space<vmem>>, vector<1x32x32xf32>
    %331 = vector.shape_cast %330 : vector<1x32x32xf32> to vector<32x32xf32>
    %cst_122 = arith.constant dense<0.000000e+00> : vector<16x32xf32>
    %332 = tpu.matmul %329, %331, %cst_122 {dimension_numbers = #tpu.dot_dimension_numbers<[1], [0], [0], [1], [0, 0, 1, 1], [], []>} : vector<16x32xf32>, vector<32x32xf32>, vector<16x32xf32> -> vector<16x32xf32>
    %333 = vector.extract_strided_slice %247 {offsets = [1, 0], sizes = [1, 32], strides = [1, 1]} : vector<4x96xf32> to vector<1x32xf32>
    %334 = vector.broadcast %333 : vector<1x32xf32> to vector<16x32xf32>
    %335 = arith.addf %332, %334 : vector<16x32xf32>
    %c1_123 = arith.constant 1 : index
    %c0_124 = arith.constant 0 : index
    %c0_125 = arith.constant 0 : index
    %336 = vector.load %arg8[%c1_123, %c0_124, %c0_125] : memref<2x32x64xf32, #tpu.memory_space<vmem>>, vector<1x32x64xf32>
    %337 = vector.shape_cast %336 : vector<1x32x64xf32> to vector<32x64xf32>
    %cst_126 = arith.constant dense<0.000000e+00> : vector<16x64xf32>
    %338 = tpu.matmul %3, %337, %cst_126 {dimension_numbers = #tpu.dot_dimension_numbers<[1], [0], [0], [1], [0, 0, 1, 1], [], []>} : vector<16x32xf32>, vector<32x64xf32>, vector<16x64xf32> -> vector<16x64xf32>
    %339 = vector.extract_strided_slice %247 {offsets = [2, 0], sizes = [1, 64], strides = [1, 1]} : vector<4x96xf32> to vector<1x64xf32>
    %340 = vector.broadcast %339 : vector<1x64xf32> to vector<16x64xf32>
    %341 = arith.addf %338, %340 : vector<16x64xf32>
    %342 = vector.extract_strided_slice %341 {offsets = [0, 0], sizes = [16, 32], strides = [1, 1]} : vector<16x64xf32> to vector<16x32xf32>
    %343 = vector.extract_strided_slice %341 {offsets = [0, 32], sizes = [16, 32], strides = [1, 1]} : vector<16x64xf32> to vector<16x32xf32>
    %c1_127 = arith.constant 1 : index
    %c0_128 = arith.constant 0 : index
    %c0_129 = arith.constant 0 : index
    %344 = vector.load %arg9[%c1_127, %c0_128, %c0_129] : memref<2x32x32xf32, #tpu.memory_space<vmem>>, vector<1x32x32xf32>
    %345 = vector.shape_cast %344 : vector<1x32x32xf32> to vector<32x32xf32>
    %346 = vector.extract_strided_slice %335 {offsets = [0, 0], sizes = [16, 16], strides = [1, 1]} : vector<16x32xf32> to vector<16x16xf32>
    %347 = vector.extract_strided_slice %342 {offsets = [0, 0], sizes = [16, 16], strides = [1, 1]} : vector<16x32xf32> to vector<16x16xf32>
    %348 = vector.extract_strided_slice %343 {offsets = [0, 0], sizes = [16, 16], strides = [1, 1]} : vector<16x32xf32> to vector<16x16xf32>
    %cst_130 = arith.constant dense<0.000000e+00> : vector<16x16xf32>
    %349 = tpu.matmul %346, %347, %cst_130 {dimension_numbers = #tpu.dot_dimension_numbers<[1], [1], [0], [0], [0, 0, 1, 0], [], []>} : vector<16x16xf32>, vector<16x16xf32>, vector<16x16xf32> -> vector<16x16xf32>
    %cst_131 = arith.constant 2.500000e-01 : f32
    %350 = vector.broadcast %cst_131 : f32 to vector<16x16xf32>
    %351 = arith.mulf %349, %350 : vector<16x16xf32>
    %cst_132 = arith.constant -1.000000e+30 : f32
    %352 = vector.broadcast %cst_132 : f32 to vector<16x16xf32>
    %353 = arith.select %31, %352, %351 : vector<16x16xi1>, vector<16x16xf32>
    %cst_133 = arith.constant dense<0xFF800000> : vector<16xf32>
    %354 = vector.multi_reduction <maximumf>, %353, %cst_133 [1] : vector<16x16xf32> to vector<16xf32>
    %355 = vector.shape_cast %354 : vector<16xf32> to vector<16x1xf32>
    %356 = vector.broadcast %355 : vector<16x1xf32> to vector<16x16xf32>
    %357 = arith.subf %353, %356 : vector<16x16xf32>
    %358 = math.exp %357 : vector<16x16xf32>
    %cst_134 = arith.constant dense<0.000000e+00> : vector<16xf32>
    %359 = vector.multi_reduction <add>, %358, %cst_134 [1] : vector<16x16xf32> to vector<16xf32>
    %360 = vector.shape_cast %359 : vector<16xf32> to vector<16x1xf32>
    %361 = tpu.reciprocal %360 {approx = true} : vector<16x1xf32> -> vector<16x1xf32>
    %362 = vector.broadcast %361 : vector<16x1xf32> to vector<16x16xf32>
    %363 = arith.mulf %358, %362 : vector<16x16xf32>
    %cst_135 = arith.constant dense<0.000000e+00> : vector<16x16xf32>
    %364 = tpu.matmul %363, %348, %cst_135 {dimension_numbers = #tpu.dot_dimension_numbers<[1], [0], [0], [1], [0, 0, 1, 1], [], []>} : vector<16x16xf32>, vector<16x16xf32>, vector<16x16xf32> -> vector<16x16xf32>
    %365 = vector.extract_strided_slice %345 {offsets = [0, 0], sizes = [16, 32], strides = [1, 1]} : vector<32x32xf32> to vector<16x32xf32>
    %cst_136 = arith.constant dense<0.000000e+00> : vector<16x32xf32>
    %366 = tpu.matmul %364, %365, %cst_136 {dimension_numbers = #tpu.dot_dimension_numbers<[1], [0], [0], [1], [0, 0, 1, 1], [], []>} : vector<16x16xf32>, vector<16x32xf32>, vector<16x32xf32> -> vector<16x32xf32>
    %367 = vector.extract_strided_slice %335 {offsets = [0, 16], sizes = [16, 16], strides = [1, 1]} : vector<16x32xf32> to vector<16x16xf32>
    %368 = vector.extract_strided_slice %342 {offsets = [0, 16], sizes = [16, 16], strides = [1, 1]} : vector<16x32xf32> to vector<16x16xf32>
    %369 = vector.extract_strided_slice %343 {offsets = [0, 16], sizes = [16, 16], strides = [1, 1]} : vector<16x32xf32> to vector<16x16xf32>
    %cst_137 = arith.constant dense<0.000000e+00> : vector<16x16xf32>
    %370 = tpu.matmul %367, %368, %cst_137 {dimension_numbers = #tpu.dot_dimension_numbers<[1], [1], [0], [0], [0, 0, 1, 0], [], []>} : vector<16x16xf32>, vector<16x16xf32>, vector<16x16xf32> -> vector<16x16xf32>
    %cst_138 = arith.constant 2.500000e-01 : f32
    %371 = vector.broadcast %cst_138 : f32 to vector<16x16xf32>
    %372 = arith.mulf %370, %371 : vector<16x16xf32>
    %cst_139 = arith.constant -1.000000e+30 : f32
    %373 = vector.broadcast %cst_139 : f32 to vector<16x16xf32>
    %374 = arith.select %31, %373, %372 : vector<16x16xi1>, vector<16x16xf32>
    %cst_140 = arith.constant dense<0xFF800000> : vector<16xf32>
    %375 = vector.multi_reduction <maximumf>, %374, %cst_140 [1] : vector<16x16xf32> to vector<16xf32>
    %376 = vector.shape_cast %375 : vector<16xf32> to vector<16x1xf32>
    %377 = vector.broadcast %376 : vector<16x1xf32> to vector<16x16xf32>
    %378 = arith.subf %374, %377 : vector<16x16xf32>
    %379 = math.exp %378 : vector<16x16xf32>
    %cst_141 = arith.constant dense<0.000000e+00> : vector<16xf32>
    %380 = vector.multi_reduction <add>, %379, %cst_141 [1] : vector<16x16xf32> to vector<16xf32>
    %381 = vector.shape_cast %380 : vector<16xf32> to vector<16x1xf32>
    %382 = tpu.reciprocal %381 {approx = true} : vector<16x1xf32> -> vector<16x1xf32>
    %383 = vector.broadcast %382 : vector<16x1xf32> to vector<16x16xf32>
    %384 = arith.mulf %379, %383 : vector<16x16xf32>
    %cst_142 = arith.constant dense<0.000000e+00> : vector<16x16xf32>
    %385 = tpu.matmul %384, %369, %cst_142 {dimension_numbers = #tpu.dot_dimension_numbers<[1], [0], [0], [1], [0, 0, 1, 1], [], []>} : vector<16x16xf32>, vector<16x16xf32>, vector<16x16xf32> -> vector<16x16xf32>
    %386 = vector.extract_strided_slice %345 {offsets = [16, 0], sizes = [16, 32], strides = [1, 1]} : vector<32x32xf32> to vector<16x32xf32>
    %cst_143 = arith.constant dense<0.000000e+00> : vector<16x32xf32>
    %387 = tpu.matmul %385, %386, %cst_143 {dimension_numbers = #tpu.dot_dimension_numbers<[1], [0], [0], [1], [0, 0, 1, 1], [], []>} : vector<16x16xf32>, vector<16x32xf32>, vector<16x32xf32> -> vector<16x32xf32>
    %388 = arith.addf %366, %387 : vector<16x32xf32>
    %389 = vector.extract_strided_slice %245 {offsets = [3, 0], sizes = [1, 32], strides = [1, 1]} : vector<9x32xf32> to vector<1x32xf32>
    %390 = vector.broadcast %389 : vector<1x32xf32> to vector<16x32xf32>
    %391 = arith.addf %388, %390 : vector<16x32xf32>
    %392 = arith.addf %391, %329 : vector<16x32xf32>
    %393 = vector.extract_strided_slice %245 {offsets = [4, 0], sizes = [1, 32], strides = [1, 1]} : vector<9x32xf32> to vector<1x32xf32>
    %394 = vector.extract_strided_slice %245 {offsets = [5, 0], sizes = [1, 32], strides = [1, 1]} : vector<9x32xf32> to vector<1x32xf32>
    %cst_144 = arith.constant dense<0.000000e+00> : vector<16xf32>
    %395 = vector.multi_reduction <add>, %392, %cst_144 [1] : vector<16x32xf32> to vector<16xf32>
    %396 = vector.shape_cast %395 : vector<16xf32> to vector<16x1xf32>
    %cst_145 = arith.constant 3.200000e+01 : f32
    %397 = vector.broadcast %cst_145 : f32 to vector<16x1xf32>
    %398 = arith.divf %396, %397 : vector<16x1xf32>
    %399 = vector.broadcast %398 : vector<16x1xf32> to vector<16x32xf32>
    %400 = arith.subf %392, %399 : vector<16x32xf32>
    %401 = arith.mulf %400, %400 : vector<16x32xf32>
    %cst_146 = arith.constant dense<0.000000e+00> : vector<16xf32>
    %402 = vector.multi_reduction <add>, %401, %cst_146 [1] : vector<16x32xf32> to vector<16xf32>
    %403 = vector.shape_cast %402 : vector<16xf32> to vector<16x1xf32>
    %cst_147 = arith.constant 3.200000e+01 : f32
    %404 = vector.broadcast %cst_147 : f32 to vector<16x1xf32>
    %405 = arith.divf %403, %404 : vector<16x1xf32>
    %cst_148 = arith.constant 9.99999974E-6 : f32
    %406 = vector.broadcast %cst_148 : f32 to vector<16x1xf32>
    %407 = arith.addf %405, %406 : vector<16x1xf32>
    %408 = math.rsqrt %407 : vector<16x1xf32>
    %409 = vector.broadcast %408 : vector<16x1xf32> to vector<16x32xf32>
    %410 = arith.mulf %400, %409 : vector<16x32xf32>
    %411 = vector.broadcast %393 : vector<1x32xf32> to vector<16x32xf32>
    %412 = arith.mulf %410, %411 : vector<16x32xf32>
    %413 = vector.broadcast %394 : vector<1x32xf32> to vector<16x32xf32>
    %414 = arith.addf %412, %413 : vector<16x32xf32>
    %415 = vector.broadcast %6 : vector<16x1xf32> to vector<16x32xf32>
    %416 = arith.mulf %414, %415 : vector<16x32xf32>
    %c1_149 = arith.constant 1 : index
    %c0_150 = arith.constant 0 : index
    %c0_151 = arith.constant 0 : index
    %417 = vector.load %arg10[%c1_149, %c0_150, %c0_151] : memref<2x32x64xf32, #tpu.memory_space<vmem>>, vector<1x32x64xf32>
    %418 = vector.shape_cast %417 : vector<1x32x64xf32> to vector<32x64xf32>
    %cst_152 = arith.constant dense<0.000000e+00> : vector<16x64xf32>
    %419 = tpu.matmul %416, %418, %cst_152 {dimension_numbers = #tpu.dot_dimension_numbers<[1], [0], [0], [1], [0, 0, 1, 1], [], []>} : vector<16x32xf32>, vector<32x64xf32>, vector<16x64xf32> -> vector<16x64xf32>
    %420 = vector.extract_strided_slice %247 {offsets = [3, 0], sizes = [1, 64], strides = [1, 1]} : vector<4x96xf32> to vector<1x64xf32>
    %421 = vector.broadcast %420 : vector<1x64xf32> to vector<16x64xf32>
    %422 = arith.addf %419, %421 : vector<16x64xf32>
    %cst_153 = arith.constant 0.000000e+00 : f32
    %423 = vector.broadcast %cst_153 : f32 to vector<16x64xf32>
    %424 = arith.maximumf %422, %423 : vector<16x64xf32>
    %c1_154 = arith.constant 1 : index
    %c0_155 = arith.constant 0 : index
    %c0_156 = arith.constant 0 : index
    %425 = vector.load %arg11[%c1_154, %c0_155, %c0_156] : memref<2x64x32xf32, #tpu.memory_space<vmem>>, vector<1x64x32xf32>
    %426 = vector.shape_cast %425 : vector<1x64x32xf32> to vector<64x32xf32>
    %cst_157 = arith.constant dense<0.000000e+00> : vector<16x32xf32>
    %427 = tpu.matmul %424, %426, %cst_157 {dimension_numbers = #tpu.dot_dimension_numbers<[1], [0], [0], [1], [0, 0, 1, 1], [], []>} : vector<16x64xf32>, vector<64x32xf32>, vector<16x32xf32> -> vector<16x32xf32>
    %428 = vector.extract_strided_slice %245 {offsets = [6, 0], sizes = [1, 32], strides = [1, 1]} : vector<9x32xf32> to vector<1x32xf32>
    %429 = vector.broadcast %428 : vector<1x32xf32> to vector<16x32xf32>
    %430 = arith.addf %427, %429 : vector<16x32xf32>
    %431 = arith.addf %430, %416 : vector<16x32xf32>
    %432 = vector.extract_strided_slice %245 {offsets = [7, 0], sizes = [1, 32], strides = [1, 1]} : vector<9x32xf32> to vector<1x32xf32>
    %433 = vector.extract_strided_slice %245 {offsets = [8, 0], sizes = [1, 32], strides = [1, 1]} : vector<9x32xf32> to vector<1x32xf32>
    %cst_158 = arith.constant dense<0.000000e+00> : vector<16xf32>
    %434 = vector.multi_reduction <add>, %431, %cst_158 [1] : vector<16x32xf32> to vector<16xf32>
    %435 = vector.shape_cast %434 : vector<16xf32> to vector<16x1xf32>
    %cst_159 = arith.constant 3.200000e+01 : f32
    %436 = vector.broadcast %cst_159 : f32 to vector<16x1xf32>
    %437 = arith.divf %435, %436 : vector<16x1xf32>
    %438 = vector.broadcast %437 : vector<16x1xf32> to vector<16x32xf32>
    %439 = arith.subf %431, %438 : vector<16x32xf32>
    %440 = arith.mulf %439, %439 : vector<16x32xf32>
    %cst_160 = arith.constant dense<0.000000e+00> : vector<16xf32>
    %441 = vector.multi_reduction <add>, %440, %cst_160 [1] : vector<16x32xf32> to vector<16xf32>
    %442 = vector.shape_cast %441 : vector<16xf32> to vector<16x1xf32>
    %cst_161 = arith.constant 3.200000e+01 : f32
    %443 = vector.broadcast %cst_161 : f32 to vector<16x1xf32>
    %444 = arith.divf %442, %443 : vector<16x1xf32>
    %cst_162 = arith.constant 9.99999974E-6 : f32
    %445 = vector.broadcast %cst_162 : f32 to vector<16x1xf32>
    %446 = arith.addf %444, %445 : vector<16x1xf32>
    %447 = math.rsqrt %446 : vector<16x1xf32>
    %448 = vector.broadcast %447 : vector<16x1xf32> to vector<16x32xf32>
    %449 = arith.mulf %439, %448 : vector<16x32xf32>
    %450 = vector.broadcast %432 : vector<1x32xf32> to vector<16x32xf32>
    %451 = arith.mulf %449, %450 : vector<16x32xf32>
    %452 = vector.broadcast %433 : vector<1x32xf32> to vector<16x32xf32>
    %453 = arith.addf %451, %452 : vector<16x32xf32>
    %454 = vector.broadcast %6 : vector<16x1xf32> to vector<16x32xf32>
    %455 = arith.mulf %453, %454 : vector<16x32xf32>
    %c0_163 = arith.constant 0 : index
    %c0_164 = arith.constant 0 : index
    %c0_165 = arith.constant 0 : index
    %456 = vector.load %arg14[%c0_163, %c0_164, %c0_165] : memref<1x16x32xf32, #tpu.memory_space<vmem>>, vector<1x16x32xf32>
    %457 = vector.shape_cast %456 : vector<1x16x32xf32> to vector<16x32xf32>
    %458 = vector.shape_cast %455 : vector<16x32xf32> to vector<1x16x32xf32>
    tpu.vector_store %arg14[%c0_163, %c0_164, %c0_165], %458 {strides = array<i32>} : memref<1x16x32xf32, #tpu.memory_space<vmem>>, vector<1x16x32xf32>,
    return
  }
  func.func @transform_0(%arg0: i32) -> (i32, i32, i32) {
    %c0_i32 = arith.constant 0 : i32
    %c0_i32_0 = arith.constant 0 : i32
    %c0_i32_1 = arith.constant 0 : i32
    return %arg0, %c0_i32, %c0_i32_0 : i32, i32, i32
  }
  func.func @transform_1(%arg0: i32) -> (i32, i32, i32) {
    %c0_i32 = arith.constant 0 : i32
    %c0_i32_0 = arith.constant 0 : i32
    %c0_i32_1 = arith.constant 0 : i32
    return %arg0, %c0_i32, %c0_i32_0 : i32, i32, i32
  }
  func.func @transform_2(%arg0: i32) -> (i32, i32, i32) {
    %c0_i32 = arith.constant 0 : i32
    %c0_i32_0 = arith.constant 0 : i32
    %c0_i32_1 = arith.constant 0 : i32
    return %arg0, %c0_i32, %c0_i32_0 : i32, i32, i32
  }
  func.func @transform_3(%arg0: i32) -> (i32, i32, i32) {
    %c0_i32 = arith.constant 0 : i32
    %c0_i32_0 = arith.constant 0 : i32
    %c0_i32_1 = arith.constant 0 : i32
    return %arg0, %c0_i32, %c0_i32_0 : i32, i32, i32
  }
  func.func @transform_4(%arg0: i32) -> (i32, i32, i32) {
    %c0_i32 = arith.constant 0 : i32
    %c0_i32_0 = arith.constant 0 : i32
    %c0_i32_1 = arith.constant 0 : i32
    %c0_i32_2 = arith.constant 0 : i32
    return %c0_i32, %c0_i32_0, %c0_i32_1 : i32, i32, i32
  }
  func.func @transform_5(%arg0: i32) -> (i32, i32, i32) {
    %c0_i32 = arith.constant 0 : i32
    %c0_i32_0 = arith.constant 0 : i32
    %c0_i32_1 = arith.constant 0 : i32
    %c0_i32_2 = arith.constant 0 : i32
    return %c0_i32, %c0_i32_0, %c0_i32_1 : i32, i32, i32
  }
  func.func @transform_6(%arg0: i32) -> (i32, i32, i32) {
    %c0_i32 = arith.constant 0 : i32
    %c0_i32_0 = arith.constant 0 : i32
    %c0_i32_1 = arith.constant 0 : i32
    %c0_i32_2 = arith.constant 0 : i32
    return %c0_i32, %c0_i32_0, %c0_i32_1 : i32, i32, i32
  }
  func.func @transform_7(%arg0: i32) -> (i32, i32, i32) {
    %c0_i32 = arith.constant 0 : i32
    %c0_i32_0 = arith.constant 0 : i32
    %c0_i32_1 = arith.constant 0 : i32
    %c0_i32_2 = arith.constant 0 : i32
    return %c0_i32, %c0_i32_0, %c0_i32_1 : i32, i32, i32
  }
  func.func @transform_8(%arg0: i32) -> (i32, i32, i32) {
    %c0_i32 = arith.constant 0 : i32
    %c0_i32_0 = arith.constant 0 : i32
    %c0_i32_1 = arith.constant 0 : i32
    %c0_i32_2 = arith.constant 0 : i32
    return %c0_i32, %c0_i32_0, %c0_i32_1 : i32, i32, i32
  }
  func.func @transform_9(%arg0: i32) -> (i32, i32, i32) {
    %c0_i32 = arith.constant 0 : i32
    %c0_i32_0 = arith.constant 0 : i32
    %c0_i32_1 = arith.constant 0 : i32
    %c0_i32_2 = arith.constant 0 : i32
    return %c0_i32, %c0_i32_0, %c0_i32_1 : i32, i32, i32
  }
  func.func @transform_10(%arg0: i32) -> (i32, i32, i32) {
    %c0_i32 = arith.constant 0 : i32
    %c0_i32_0 = arith.constant 0 : i32
    %c0_i32_1 = arith.constant 0 : i32
    %c0_i32_2 = arith.constant 0 : i32
    return %c0_i32, %c0_i32_0, %c0_i32_1 : i32, i32, i32
  }
  func.func @transform_11(%arg0: i32) -> (i32, i32, i32) {
    %c0_i32 = arith.constant 0 : i32
    %c0_i32_0 = arith.constant 0 : i32
    %c0_i32_1 = arith.constant 0 : i32
    %c0_i32_2 = arith.constant 0 : i32
    return %c0_i32, %c0_i32_0, %c0_i32_1 : i32, i32, i32
  }
  func.func @transform_12(%arg0: i32) -> (i32, i32, i32) {
    %c0_i32 = arith.constant 0 : i32
    %c0_i32_0 = arith.constant 0 : i32
    %c0_i32_1 = arith.constant 0 : i32
    %c0_i32_2 = arith.constant 0 : i32
    return %c0_i32, %c0_i32_0, %c0_i32_1 : i32, i32, i32
  }
  func.func @transform_13(%arg0: i32) -> (i32, i32, i32) {
    %c0_i32 = arith.constant 0 : i32
    %c0_i32_0 = arith.constant 0 : i32
    %c0_i32_1 = arith.constant 0 : i32
    return %arg0, %c0_i32, %c0_i32_0 : i32, i32, i32
  }
}

</mosaic_0001>

<bundles_post_ra>
// kernel: decoder_forward.1
= control target key start
LH: loop header
LB: loop body
LE: loop exit
PB: predicated region body
PF: predicated region fallthrough
CT: control target
= control target key end

     0   :  { %vm122_vm0 = vcmask 261120   ;;  %s5097_s0 = inlined_call_operand.vmem [shape: f32[1,16,32], index: 0, kind: input, shape index: {}]   ;;  %s5098_s1 = inlined_call_operand.vmem [shape: f32[1,16,32], index: 1, kind: input, shape index: {}]   ;;  %s5099_s2 = inlined_call_operand.vmem [shape: f32[1,16,3], index: 2, kind: input, shape index: {}]   ;;  %s5100_s3 = inlined_call_operand.vmem [shape: f32[1,1,16], index: 3, kind: input, shape index: {}]   ;;  %s5101_s4 = inlined_call_operand.vmem [shape: f32[2,32,96], index: 4, kind: input, shape index: {}]   ;;  %s5102_s5 = inlined_call_operand.vmem [shape: f32[2,32,32], index: 5, kind: input, shape index: {}]   ;;  %s5103_s6 = inlined_call_operand.vmem [shape: f32[2,32,32], index: 6, kind: input, shape index: {}]   ;;  %s5104_s7 = inlined_call_operand.vmem [shape: f32[2,32,64], index: 7, kind: input, shape index: {}]   ;;  %s5105_s8 = inlined_call_operand.vmem [shape: f32[2,32,32], index: 8, kind: input, shape index: {}]   ;;  %s5106_s9 = inlined_call_operand.vmem [shape: f32[2,32,64], index: 9, kind: input, shape index: {}]   ;;  %s5107_s10 = inlined_call_operand.vmem [shape: f32[2,64,32], index: 10, kind: input, shape index: {}]   ;;  %s5108_s11 = inlined_call_operand.vmem [shape: f32[2,9,32], index: 11, kind: input, shape index: {}]   ;;  %s5109_s12 = inlined_call_operand.vmem [shape: f32[2,4,96], index: 12, kind: input, shape index: {}]   ;;  %s5110_s13 = inlined_call_operand.hbm [shape: f32[1,16,32], index: 13, kind: output, shape index: {}]  }
   0x1   :  { %v117_v0 = vld [vmem:[%s5101_s4 + $0x18] sm:$0xff]  ;;  %v116_v1 = vld [vmem:[%s5101_s4 + $0x10] sm:$0xff]  ;;  %v4408_v2 = vld [vmem:[%s5097_s0] sm:$0xff] }
   0x2   :  { %3897 = vmatprep.subr.mxu0 %v117_v0  ;;  %v115_v3 = vld [vmem:[%s5101_s4 + $0x8] sm:$0xff]  ;;  %3905 = vmatprep.mubr.msk.f32.mxu0 %vm122_vm0, %v4408_v2 }
   0x3   :  { %3898 = vmatpush3.msra.mxu0 %v117_v0 }
   0x4   :  { %18 = vsyncpa [#allocation3], 0  ;;  %3899 = vmatprep.subr.mxu0 %v116_v1  ;;  %v114_v4 = vld [vmem:[%s5101_s4] sm:$0xff]  ;;  %v4421_v5 = vld [vmem:[%s5097_s0 + $0x8] sm:$0xff]  ;;  %v52_v6 = vlaneseq  ;;  %vm214_vm1 = vcmask 130048   ;;  %s4318_s0 = smov 80  }
   0x5   :  { %3900 = vmatpush3.msra.mxu0 %v116_v1  ;;  %v4433_v9 = vld [vmem:[%s5109_s12] sm:$0xf]  ;;  %s4319_s22 = smov 96   ;;  %v4320_v15 = vmov 1   ;;  %s4321_s23 = smov 112   ;;  %v4458_v16 = vld [vmem:[%s5099_s2 + $0x8] sm:$0xff] }
   0x6   :  { %3901 = vmatprep.subr.mxu0 %v115_v3  ;;  %v4425_v7 = vshrl.u32 %v52_v6, 7  ;;  %4203 = vset.pattern.permute.xlu1 %v4320_v15  ;;  %v4463_v17 = vld [vmem:[%s5099_s2] sm:$0xff]  ;;  %v4322_v24 = vmov 0   ;;  %v58_v27 = vand.u32 127, %v52_v6  ;;  %s4324_s29 = smov 48   ;;  %s4326_s16 = smov [#allocation2]  }
   0x7   :  { %3902 = vmatpush3.msra.mxu0 %v115_v3  ;;  %4202 = vset.pattern.permute.xlu0 %v4320_v15  ;;  %v51_v25 = vld [vmem:[%s5100_s3] sm:$0x1]  ;;  %s4323_s3 = smov 64  }
   0x8   :  { %3903 = vmatprep.subr.mxu0 %v114_v4  ;;  %v4428_v8 = vsub.s32 0, %v4425_v7  ;;  %v54_v26 = vadd.s32 8, %v4425_v7  ;;  %vm76_vm2 = vcmp.gt.f32.partialorder %v51_v25, 0.0  ;;  %v4483_v29 = vcvt.s32.f32 %v58_v27 }
   0x9   :  { %3904 = vmatpush3.msra.mxu0 %v114_v4  ;;  %v77_v30 = vsel %vm76_vm2, 1, %v4322_v24  ;;  %v55_v32 = vcvt.s32.f32 %v4425_v7 }
   0xa   :  { %3906 = vmatmul.mubr.msk.f32.vlgmr.msra.gmra.mxu0 %vm122_vm0, %v4421_v5  ;;  %v121_v10 = vrot.slane %v4433_v9, %v4428_v8  ;;  %v56_v28 = vcvt.s32.f32 %v54_v26  ;;  %v81_v33 = vrot.slane %v77_v30, %v4428_v8 }
   0xb   :  { %vm72_vm5 = vcmp.gt.f32.partialorder %v4483_v29, %v55_v32 }
   0xc   :  { %vm73_vm3 = vcmp.gt.f32.partialorder %v4483_v29, %v56_v28  ;;  %vm82_vm8 = vcmp.eq.s32.totalorder %v81_v33, 1  ;;  %v207_v33 = vld [vmem:[%s5102_s5 + $0x18] sm:$0xff] }
  0xca   :  { %v3907_v11 = vpop.f32.mrf.mxu0 }
  0xcb   :  { %v4437_v12 = vadd.f32 %v3907_v11, %v121_v10 }
  0xcc   :  { %v195_v13 = vpop.f32.mrf.mxu0 }
  0xcd   :  { %v4439_v14 = vadd.f32 %v195_v13, %v121_v10  ;;  %417 = vrot.lane.b32.xlu1 %v4437_v12, %s4318_s0  ;;  %212 = vrot.lane.b32.xlu0 %v4437_v12, %s4319_s22 }
  0xcf   :  { %3912 = vmatprep.mubr.msk.f32.mxu1 %vm214_vm1, %v4439_v14 }
  0xd1   :  { %415 = vrot.lane.b32.xlu1 %v4439_v14, %s4318_s0  ;;  %210 = vrot.lane.b32.xlu0 %v4439_v14, %s4319_s22 }
  0xd5   :  { %413 = vrot.lane.b32.xlu1 %v4437_v12, %s4321_s23  ;;  %411 = vrot.lane.b32.xlu0 %v4439_v14, %s4321_s23 }
  0xd9   :  { %67 = vperm.xlu1 %4203, %v4458_v16   ;;  %62 = vperm.xlu0 %4202, %v4463_v17  }
  0xdd   :  { %4205 = vset.pattern.permute.xlu1 %v4322_v24  ;;  %4204 = vset.pattern.permute.xlu0 %v4322_v24 }
 0x13f   :  { %v213_v18 = vpop.permute.xlu0 %212  ;;  %v418_v19 = vpop.permute.xlu1 %417 }
 0x140   :  { %3908 = vmatprep.subr.msk.mxu1 %vm214_vm1, %v213_v18 }
 0x141   :  { %3909 = vmatpush3.xpose.msk.msra.mxu1 %vm214_vm1, %v213_v18 }
 0x143   :  { %v211_v20 = vpop.permute.xlu0 %210  ;;  %v416_v22 = vpop.permute.xlu1 %415 }
 0x144   :  { %3910 = vmatprep.subr.msk.mxu1 %vm214_vm1, %v211_v20 }
 0x145   :  { %3911 = vmatpush3.xpose.msk.msra.mxu1 %vm214_vm1, %v211_v20 }
 0x146   :  { %3922 = vmatprep.subr.msk.mxu1 %vm214_vm1, %v418_v19 }
 0x147   :  { %v412_v21 = vpop.permute.xlu0 %411  ;;  %v414_v23 = vpop.permute.xlu1 %413 }
 0x148   :  { %3913 = vmatmul.mubr.msk.f32.vlgmr.msra.gmra.mxu1 %vm214_vm1, %v4437_v12 }
 0x149   :  { %3923 = vmatpush3.xpose.msk.msra.mxu1 %vm214_vm1, %v418_v19  ;;  %3926 = vmatprep.mubr.msk.f32.mxu1 %vm214_vm1, %v412_v21 }
 0x14a   :  { %3924 = vmatprep.subr.msk.mxu1 %vm214_vm1, %v416_v22 }
 0x14d   :  { %3925 = vmatpush3.xpose.msk.msra.mxu1 %vm214_vm1, %v416_v22 }
 0x150   :  { %3927 = vmatmul.mubr.msk.f32.vlgmr.msra.gmra.mxu1 %vm214_vm1, %v414_v23 }
 0x154   :  { %v68_v31 = vpop.permute.xlu1 %67  ;;  %v63_v34 = vpop.permute.xlu0 %62 }
 0x155   :  { %vm71_vm4 = vcmp.lt.f32.partialorder %v4483_v29, %v68_v31  ;;  %vm70_vm6 = vcmp.lt.f32.partialorder %v4483_v29, %v63_v34  ;;  %v206_v34 = vld [vmem:[%s5102_s5 + $0x10] sm:$0xff] }
 0x156   :  { %vm75_vm7 = vmor %vm71_vm4, %vm73_vm3  ;;  %vm1733_vm4 = vcmask 523264  }
 0x157   :  { %vm74_vm9 = vmor %vm70_vm6, %vm72_vm5 }
 0x158   :  { %vm4491_vm10 = vmor %vm75_vm7, %vm82_vm8 }
 0x159   :  { %vm4495_vm11 = vmor %vm74_vm9, %vm82_vm8 }
 0x208   :  { %v3914_v35 = vpop.f32.mrf.mxu1 }
 0x209   :  { %v299_v37 = vmul.f32 0.25, %v3914_v35  ;;  %v205_v35 = vld [vmem:[%s5102_s5 + $0x8] sm:$0xff] }
 0x20a   :  { %v289_v39 = vpop.f32.mrf.mxu1 }
 0x20b   :  { %v298_v40 = vmul.f32 0.25, %v289_v39  ;;  %v301_v41 = vsel %vm4491_vm10, -1e+30, %v299_v37 }
 0x20c   :  { %v305_v42 = vsel %vm214_vm1, %v301_v41, -inf }
 0x20d   :  { %306 = vmax.xlane.f32.xlu0 %v305_v42  ;;  %v300_v43 = vsel %vm4495_vm11, -1e+30, %v298_v40  ;;  %v204_v42 = vld [vmem:[%s5102_s5] sm:$0xff] }
 0x20e   :  { %v302_v44 = vsel %vm214_vm1, %v300_v43, -inf }
 0x20f   :  { %303 = vmax.xlane.f32.xlu1 %v302_v44  ;;  %v4546_v44 = vld [vmem:[%s5108_s11] sm:$0xff] }
 0x210   :  { %v3928_v45 = vpop.f32.mrf.mxu1 }
 0x211   :  { %v503_v46 = vmul.f32 0.25, %v3928_v45 }
 0x212   :  { %v493_v47 = vpop.f32.mrf.mxu1 }
 0x213   :  { %v502_v48 = vmul.f32 0.25, %v493_v47  ;;  %v505_v49 = vsel %vm4491_vm10, -1e+30, %v503_v46  ;;  %v780_v46 = vrot.slane %v4546_v44, %v4428_v8 }
 0x214   :  { %v509_v50 = vsel %vm214_vm1, %v505_v49, -inf }
 0x215   :  { %510 = vmax.xlane.f32.xlu1 %v509_v50  ;;  %v504_v51 = vsel %vm4495_vm11, -1e+30, %v502_v48 }
 0x216   :  { %v506_v52 = vsel %vm214_vm1, %v504_v51, -inf }
 0x217   :  { %507 = vmax.xlane.f32.xlu0 %v506_v52 }
 0x226   :  { %324 = vrot.lane.b32.xlu1 %v4439_v14, %s4323_s3 }
 0x22d   :  { %326 = vrot.lane.b32.xlu0 %v4437_v12, %s4323_s3 }
 0x296   :  { %v307_v53 = vpop.xlane.xlu0 %306 }
 0x297   :  { %v309_v54 = vsub.f32 %v301_v41, %v307_v53 }
 0x298   :  { %v304_v55 = vpop.xlane.xlu1 %303 }
 0x299   :  { %v312_v56 = vmul.f32 1.442695, %v309_v54  ;;  %v308_v57 = vsub.f32 %v300_v43, %v304_v55 }
 0x29b   :  { %4207 = vpow2.f32 %v312_v56  ;;  %v310_v58 = vmul.f32 1.442695, %v308_v57 }
 0x29d   :  { %4209 = vpow2.f32 %v310_v58 }
 0x29e   :  { %v511_v59 = vpop.xlane.xlu1 %510 }
 0x29f   :  { %v513_v60 = vsub.f32 %v505_v49, %v511_v59 }
 0x2a0   :  { %v508_v61 = vpop.xlane.xlu0 %507 }
 0x2a1   :  { %v516_v62 = vmul.f32 1.442695, %v513_v60  ;;  %v512_v63 = vsub.f32 %v504_v51, %v508_v61 }
 0x2a2   :  { %v325_v3 = vpop.permute.xlu1 %324 }
 0x2a3   :  { %4211 = vpow2.f32 %v516_v62  ;;  %v514_v0 = vmul.f32 1.442695, %v512_v63 }
 0x2a4   :  { %v327_v1 = vpop.permute.xlu0 %326 }
 0x2a5   :  { %4213 = vpow2.f32 %v514_v0  ;;  %3915 = vmatprep.subr.mxu0 %v327_v1 }
 0x2a6   :  { %3916 = vmatpush3.msra.mxu0 %v327_v1 }
 0x2a7   :  { %3917 = vmatprep.subr.mxu0 %v325_v3 }
 0x2a8   :  { %v4208_v4 = vpop.eup %4207  ;;  %3918 = vmatpush3.msra.mxu0 %v325_v3  ;;  %v925_v3 = vld [vmem:[%s5104_s7 + $0x10] sm:$0xff] }
 0x2a9   :  { %v317_v6 = vsel %vm214_vm1, %v4208_v4, 0.0 }
 0x2aa   :  { %v4210_v10 = vpop.eup %4209  ;;  %318 = vadd.xlane.f32.xlu1 %v317_v6  ;;  %v923_v6 = vld [vmem:[%s5104_s7] sm:$0xff] }
 0x2ab   :  { %v314_v11 = vsel %vm214_vm1, %v4210_v10, 0.0 }
 0x2ac   :  { %315 = vadd.xlane.f32.xlu0 %v314_v11  ;;  %v48_v11 = vld [vmem:[%s5098_s1 + $0x8] sm:$0xff] }
 0x2b0   :  { %v4212_v13 = vpop.eup %4211 }
 0x2b1   :  { %v521_v15 = vsel %vm214_vm1, %v4212_v13, 0.0 }
 0x2b2   :  { %v4214_v18 = vpop.eup %4213  ;;  %522 = vadd.xlane.f32.xlu1 %v521_v15  ;;  %v836_v15 = vld [vmem:[%s5103_s6 + $0x10] sm:$0xff] }
 0x2b3   :  { %v518_v19 = vsel %vm214_vm1, %v4214_v18, 0.0 }
 0x2b4   :  { %519 = vadd.xlane.f32.xlu0 %v518_v19  ;;  %v834_v19 = vld [vmem:[%s5103_s6] sm:$0xff] }
 0x2c3   :  { %530 = vrot.lane.b32.xlu1 %v4437_v12, %s4324_s29 }
 0x2ca   :  { %528 = vrot.lane.b32.xlu0 %v4439_v14, %s4324_s29 }
 0x333   :  { %v319_v20 = vpop.xlane.xlu1 %318 }
 0x334   :  { %4215 = vrcp.f32 %v319_v20 }
 0x335   :  { %v316_v21 = vpop.xlane.xlu0 %315 }
 0x336   :  { %4217 = vrcp.f32 %v316_v21 }
 0x33b   :  { %v523_v22 = vpop.xlane.xlu1 %522 }
 0x33c   :  { %4219 = vrcp.f32 %v523_v22 }
 0x33d   :  { %v520_v23 = vpop.xlane.xlu0 %519 }
 0x33e   :  { %4221 = vrcp.f32 %v520_v23 }
 0x33f   :  { %v531_v24 = vpop.permute.xlu1 %530 }
 0x340   :  { %3929 = vmatprep.subr.mxu0 %v531_v24 }
 0x341   :  { %v4216_v25 = vpop.eup %4215  ;;  %v529_v12 = vpop.permute.xlu0 %528 }
 0x342   :  { %v323_v28 = vmul.f32 %v4216_v25, %v4208_v4  ;;  %v924_v4 = vld [vmem:[%s5104_s7 + $0x8] sm:$0xff] }
 0x343   :  { %v4218_v26 = vpop.eup %4217 }
 0x344   :  { %v322_v27 = vmul.f32 %v4218_v26, %v4210_v10  ;;  %v4573_v10 = vld [vmem:[%s5098_s1] sm:$0xff]  ;;  %v4594_v26 = vsub.s32 1, %v4425_v7 }
 0x345   :  { %3969 = vmatprep.mubr.msk.f32.mxu1 %vm122_vm0, %v4573_v10 }
 0x346   :  { %3919 = vmatprep.mubr.msk.f32.mxu0 %vm214_vm1, %v322_v27  ;;  %v4597_v27 = vsub.s32 2, %v4425_v7 }
 0x347   :  { %3920 = vmatmul.mubr.msk.f32.vlgmr.msra.gmra.mxu0 %vm214_vm1, %v323_v28  ;;  %v815_v28 = vrot.slane %v4546_v44, %v4594_v26 }
 0x348   :  { %3930 = vmatpush3.msra.mxu0 %v531_v24 }
 0x349   :  { %3931 = vmatprep.subr.mxu0 %v529_v12  ;;  %v4220_v14 = vpop.eup %4219 }
 0x34a   :  { %3932 = vmatpush3.msra.mxu0 %v529_v12  ;;  %v527_v32 = vmul.f32 %v4220_v14, %v4212_v13  ;;  %v837_v13 = vld [vmem:[%s5103_s6 + $0x18] sm:$0xff] }
 0x34b   :  { %v4222_v30 = vpop.eup %4221  ;;  %3936 = vmatprep.subr.mxu0 %v207_v33 }
 0x34c   :  { %v526_v31 = vmul.f32 %v4222_v30, %v4214_v18  ;;  %v835_v18 = vld [vmem:[%s5103_s6 + $0x8] sm:$0xff] }
 0x34e   :  { %3933 = vmatprep.mubr.msk.f32.mxu0 %vm214_vm1, %v526_v31  ;;  %v821_v31 = vrot.slane %v4546_v44, %v4597_v27 }
 0x34f   :  { %3934 = vmatmul.mubr.msk.f32.vlgmr.msra.gmra.mxu0 %vm214_vm1, %v527_v32 }
 0x350   :  { %3937 = vmatpush3.msra.mxu0 %v207_v33 }
 0x351   :  { %3938 = vmatprep.subr.mxu0 %v206_v34 }
 0x352   :  { %3939 = vmatpush3.msra.mxu0 %v206_v34 }
 0x353   :  { %3943 = vmatprep.subr.mxu0 %v205_v35 }
 0x407   :  { %v3921_v37 = vpop.f32.mrf.mxu0 }
 0x409   :  { %v402_v39 = vpop.f32.mrf.mxu0 }
 0x40f   :  { %v3935_v40 = vpop.f32.mrf.mxu0 }
 0x411   :  { %v606_v41 = vpop.f32.mrf.mxu0 }
 0x412   :  { %3940 = vmatprep.mubr.msk.f32.mxu0 %vm214_vm1, %v606_v41 }
 0x413   :  { %3941 = vmatmul.mubr.msk.f32.vlgmr.msra.gmra.mxu0 %vm214_vm1, %v3935_v40 }
 0x414   :  { %3944 = vmatpush3.msra.mxu0 %v205_v35  ;;  %3947 = vmatprep.mubr.msk.f32.mxu0 %vm214_vm1, %v402_v39 }
 0x415   :  { %3945 = vmatprep.subr.mxu0 %v204_v42 }
 0x416   :  { %3946 = vmatpush3.msra.mxu0 %v204_v42 }
 0x417   :  { %3948 = vmatmul.mubr.msk.f32.vlgmr.msra.gmra.mxu0 %vm214_vm1, %v3921_v37  ;;  %3950 = vmatprep.subr.mxu0 %v837_v13 }
 0x418   :  { %3951 = vmatpush3.msra.mxu0 %v837_v13 }
 0x419   :  { %3952 = vmatprep.subr.mxu0 %v836_v15 }
 0x41a   :  { %3953 = vmatpush3.msra.mxu0 %v836_v15 }
 0x41b   :  { %3954 = vmatprep.subr.mxu0 %v835_v18 }
 0x41c   :  { %3955 = vmatpush3.msra.mxu0 %v835_v18 }
 0x41d   :  { %3956 = vmatprep.subr.mxu0 %v834_v19 }
 0x41e   :  { %3957 = vmatpush3.msra.mxu0 %v834_v19 }
 0x4d3   :  { %v3942_v43 = vpop.f32.mrf.mxu0 }
 0x4d5   :  { %v687_v45 = vpop.f32.mrf.mxu0 }
 0x4d7   :  { %v3949_v47 = vpop.f32.mrf.mxu0 }
 0x4d8   :  { %v774_v48 = vadd.f32 %v3949_v47, %v3942_v43  ;;  %v930_v43 = vrot.slane %v4433_v9, %v4597_v27 }
 0x4d9   :  { %v768_v49 = vpop.f32.mrf.mxu0 }
 0x4da   :  { %v782_v50 = vadd.f32 %v780_v46, %v774_v48  ;;  %v769_v51 = vadd.f32 %v768_v49, %v687_v45  ;;  %v4325_v49 = vmov 2  }
 0x4dc   :  { %v781_v52 = vadd.f32 %v780_v46, %v769_v51  ;;  %v784_v53 = vadd.f32 %v782_v50, %v4421_v5  ;;  %v95_v50 = vadd.f32 8.0, %v4463_v17  ;;  %v96_v51 = vadd.f32 8.0, %v4458_v16 }
 0x4de   :  { %v788_v54 = vsel %vm122_vm0, %v784_v53, 0.0  ;;  %v783_v55 = vadd.f32 %v781_v52, %v4408_v2  ;;  %v926_v2 = vld [vmem:[%s5104_s7 + $0x18] sm:$0xff]  ;;  %v841_v52 = vrot.slane %v4433_v9, %v4594_v26 }
 0x4df   :  { %789 = vadd.xlane.f32.xlu0 %v788_v54  ;;  %3961 = vmatprep.subr.mxu1 %v926_v2 }
 0x4e0   :  { %v785_v56 = vsel %vm122_vm0, %v783_v55, 0.0  ;;  %3962 = vmatpush3.msra.mxu1 %v926_v2 }
 0x4e1   :  { %786 = vadd.xlane.f32.xlu1 %v785_v56  ;;  %3963 = vmatprep.subr.mxu1 %v925_v3 }
 0x4e2   :  { %3964 = vmatpush3.msra.mxu1 %v925_v3 }
 0x4e3   :  { %3965 = vmatprep.subr.mxu1 %v924_v4 }
 0x4e4   :  { %3966 = vmatpush3.msra.mxu1 %v924_v4 }
 0x4e5   :  { %3967 = vmatprep.subr.mxu1 %v923_v6 }
 0x4e6   :  { %3968 = vmatpush3.msra.mxu1 %v923_v6 }
 0x4e7   :  { %3970 = vmatmul.mubr.msk.f32.vlgmr.msra.gmra.mxu1 %vm122_vm0, %v48_v11 }
 0x568   :  { %v790_v57 = vpop.xlane.xlu0 %789 }
 0x569   :  { %v793_v58 = vmul.f32 0.03125, %v790_v57 }
 0x56a   :  { %v787_v59 = vpop.xlane.xlu1 %786 }
 0x56b   :  { %v795_v60 = vsub.f32 %v784_v53, %v793_v58  ;;  %v792_v61 = vmul.f32 0.03125, %v787_v59 }
 0x56d   :  { %v794_v62 = vsub.f32 %v783_v55, %v792_v61  ;;  %v797_v63 = vmul.f32 %v795_v60, %v795_v60 }
 0x56f   :  { %v801_v0 = vsel %vm122_vm0, %v797_v63, 0.0  ;;  %v796_v1 = vmul.f32 %v794_v62, %v794_v62 }
 0x570   :  { %802 = vadd.xlane.f32.xlu1 %v801_v0 }
 0x571   :  { %v798_v5 = vsel %vm122_vm0, %v796_v1, 0.0 }
 0x572   :  { %799 = vadd.xlane.f32.xlu0 %v798_v5 }
 0x581   :  { %829 = vperm.xlu1 %4205, %v4458_v16  }
 0x585   :  { %4206 = vset.pattern.permute.xlu1 %v4325_v49 }
 0x586   :  { %86 = vperm.xlu1 %4206, %v4463_v17  }
 0x588   :  { %825 = vperm.xlu0 %4204, %v4463_v17  }
 0x58a   :  { %99 = vperm.xlu1 %4206, %v95_v50  }
 0x58e   :  { %90 = vperm.xlu1 %4206, %v4458_v16  }
 0x592   :  { %104 = vperm.xlu1 %4206, %v96_v51  }
 0x5a7   :  { %v3971_v45 = vpop.f32.mrf.mxu1 }
 0x5a8   :  { %v4619_v46 = vadd.f32 %v3971_v45, %v930_v43 }
 0x5a9   :  { %v1003_v47 = vpop.f32.mrf.mxu1 }
 0x5aa   :  { %3972 = vmatprep.subr.msk.mxu0 %vm214_vm1, %v4619_v46  ;;  %v4623_v48 = vadd.f32 %v1003_v47, %v930_v43 }
 0x5f9   :  { %v803_v20 = vpop.xlane.xlu1 %802 }
 0x5fa   :  { %v805_v21 = vmul.f32 0.03125, %v803_v20 }
 0x5fb   :  { %v800_v22 = vpop.xlane.xlu0 %799 }
 0x5fc   :  { %v807_v23 = vadd.f32 1e-05, %v805_v21  ;;  %v804_v24 = vmul.f32 0.03125, %v800_v22 }
 0x5fd   :  { %v4605_v39 = vpop.permute.xlu1 %829 }
 0x5fe   :  { %4223 = vrsqrt.f32 %v807_v23  ;;  %v806_v25 = vadd.f32 1e-05, %v804_v24 }
 0x600   :  { %4225 = vrsqrt.f32 %v806_v25 }
 0x601   :  { %v87_v57 = vpop.permute.xlu1 %86 }
 0x602   :  { %vm93_vm14 = vcmp.lt.f32.partialorder %v4483_v29, %v87_v57 }
 0x603   :  { %v4603_v35 = vpop.permute.xlu0 %825 }
 0x605   :  { %v100_v58 = vpop.permute.xlu1 %99 }
 0x606   :  { %vm107_vm15 = vcmp.ge.f32.partialorder %v4483_v29, %v100_v58 }
 0x607   :  { %vm4649_vm3 = vmor %vm93_vm14, %vm107_vm15 }
 0x609   :  { %v91_v17 = vpop.permute.xlu1 %90 }
 0x60a   :  { %vm94_vm12 = vcmp.lt.f32.partialorder %v4483_v29, %v91_v17 }
 0x60b   :  { %v4224_v12 = vpop.eup %4223 }
 0x60c   :  { %v811_v14 = vmul.f32 %v4224_v12, %v795_v60 }
 0x60d   :  { %v4226_v30 = vpop.eup %4225  ;;  %v105_v59 = vpop.permute.xlu1 %104 }
 0x60e   :  { %v810_v32 = vmul.f32 %v4226_v30, %v794_v62  ;;  %v817_v33 = vmul.f32 %v815_v28, %v811_v14  ;;  %vm108_vm13 = vcmp.ge.f32.partialorder %v4483_v29, %v105_v59 }
 0x60f   :  { %vm4643_vm2 = vmor %vm94_vm12, %vm108_vm13 }
 0x610   :  { %v816_v34 = vmul.f32 %v815_v28, %v810_v32  ;;  %v823_v37 = vadd.f32 %v821_v31, %v817_v33 }
 0x612   :  { %v822_v40 = vadd.f32 %v821_v31, %v816_v34  ;;  %v4611_v42 = vmul.f32 %v4605_v39, %v823_v37  ;;  %v1013_v37 = vld [vmem:[%s5105_s8 + $0x8] sm:$0xff] }
 0x614   :  { %v4608_v41 = vmul.f32 %v4603_v35, %v822_v40  ;;  %v1012_v40 = vld [vmem:[%s5105_s8] sm:$0xff] }
 0x616   :  { %3958 = vmatprep.mubr.msk.f32.mxu0 %vm122_vm0, %v4608_v41 }
 0x617   :  { %3959 = vmatmul.mubr.msk.f32.vlgmr.msra.gmra.mxu0 %vm122_vm0, %v4611_v42 }
 0x618   :  { %3973 = vmatpush3.xpose.msk.msra.mxu0 %vm214_vm1, %v4619_v46 }
 0x619   :  { %3974 = vmatprep.subr.msk.mxu0 %vm214_vm1, %v4623_v48 }
 0x61c   :  { %3975 = vmatpush3.xpose.msk.msra.mxu0 %vm214_vm1, %v4623_v48 }
 0x6d7   :  { %v3960_v53 = vpop.f32.mrf.mxu0 }
 0x6d8   :  { %v920_v56 = vadd.f32 %v3960_v53, %v841_v52 }
 0x6d9   :  { %v914_v54 = vpop.f32.mrf.mxu0 }
 0x6da   :  { %v915_v55 = vadd.f32 %v914_v54, %v841_v52 }
 0x6dc   :  { %3976 = vmatprep.mubr.msk.f32.mxu0 %vm214_vm1, %v915_v55 }
 0x6dd   :  { %3977 = vmatmul.mubr.msk.f32.vlgmr.msra.gmra.mxu0 %vm214_vm1, %v920_v56 }
 0x79d   :  { %v3978_v16 = vpop.f32.mrf.mxu0 }
 0x79e   :  { %v1104_v60 = vmul.f32 0.25, %v3978_v16 }
 0x79f   :  { %v1094_v62 = vpop.f32.mrf.mxu0 }
 0x7a0   :  { %v1103_v63 = vmul.f32 0.25, %v1094_v62  ;;  %v1106_v0 = vsel %vm4643_vm2, -1e+30, %v1104_v60 }
 0x7a1   :  { %v1110_v5 = vsel %vm214_vm1, %v1106_v0, -inf }
 0x7a2   :  { %1111 = vmax.xlane.f32.xlu0 %v1110_v5  ;;  %v1105_v29 = vsel %vm4649_vm3, -1e+30, %v1103_v63 }
 0x7a3   :  { %v1107_v2 = vsel %vm214_vm1, %v1105_v29, -inf }
 0x7a4   :  { %1108 = vmax.xlane.f32.xlu1 %v1107_v2 }
 0x7b5   :  { %1129 = vrot.lane.b32.xlu1 %v4623_v48, %s4319_s22 }
 0x7b8   :  { %1131 = vrot.lane.b32.xlu0 %v4619_v46, %s4319_s22 }
 0x7b9   :  { %1222 = vrot.lane.b32.xlu1 %v4619_v46, %s4321_s23 }
 0x7bc   :  { %1220 = vrot.lane.b32.xlu0 %v4623_v48, %s4321_s23 }
 0x7c0   :  { %1218 = vrot.lane.b32.xlu0 %v920_v56, %s4321_s23 }
 0x82b   :  { %v1112_v3 = vpop.xlane.xlu0 %1111 }
 0x82c   :  { %v1114_v4 = vsub.f32 %v1106_v0, %v1112_v3 }
 0x82d   :  { %v1109_v6 = vpop.xlane.xlu1 %1108 }
 0x82e   :  { %v1117_v11 = vmul.f32 1.442695, %v1114_v4  ;;  %v1113_v13 = vsub.f32 %v1105_v29, %v1109_v6  ;;  %v1015_v4 = vld [vmem:[%s5105_s8 + $0x18] sm:$0xff] }
 0x82f   :  { %v1132_v15 = vpop.permute.xlu0 %1131 }
 0x830   :  { %4227 = vpow2.f32 %v1117_v11  ;;  %v1115_v18 = vmul.f32 1.442695, %v1113_v13  ;;  %3979 = vmatprep.subr.mxu1 %v1132_v15 }
 0x831   :  { %3980 = vmatpush3.msra.mxu1 %v1132_v15  ;;  %v1130_v19 = vpop.permute.xlu1 %1129 }
 0x832   :  { %4229 = vpow2.f32 %v1115_v18  ;;  %3981 = vmatprep.subr.mxu1 %v1130_v19 }
 0x833   :  { %3982 = vmatpush3.msra.mxu1 %v1130_v19  ;;  %v1221_v33 = vpop.permute.xlu0 %1220  ;;  %v4708_v19 = vsub.s32 3, %v4425_v7 }
 0x835   :  { %v1223_v20 = vpop.permute.xlu1 %1222 }
 0x836   :  { %3986 = vmatprep.subr.msk.mxu1 %vm214_vm1, %v1223_v20 }
 0x837   :  { %v1219_v34 = vpop.permute.xlu0 %1218 }
 0x83d   :  { %v4228_v21 = vpop.eup %4227 }
 0x83e   :  { %v1122_v22 = vsel %vm214_vm1, %v4228_v21, 0.0 }
 0x83f   :  { %v4230_v23 = vpop.eup %4229  ;;  %1123 = vadd.xlane.f32.xlu1 %v1122_v22 }
 0x840   :  { %v1119_v24 = vsel %vm214_vm1, %v4230_v23, 0.0 }
 0x843   :  { %1120 = vadd.xlane.f32.xlu1 %v1119_v24 }
 0x854   :  { %1216 = vrot.lane.b32.xlu1 %v915_v55, %s4321_s23 }
 0x8c8   :  { %v1124_v25 = vpop.xlane.xlu1 %1123 }
 0x8c9   :  { %4231 = vrcp.f32 %v1124_v25 }
 0x8cc   :  { %v1121_v28 = vpop.xlane.xlu1 %1120 }
 0x8cd   :  { %4233 = vrcp.f32 %v1121_v28 }
 0x8d0   :  { %v1217_v32 = vpop.permute.xlu1 %1216 }
 0x8d6   :  { %v4232_v12 = vpop.eup %4231 }
 0x8d7   :  { %v1128_v31 = vmul.f32 %v4232_v12, %v4228_v21  ;;  %v1585_v21 = vrot.slane %v4546_v44, %v4708_v19 }
 0x8da   :  { %v4234_v14 = vpop.eup %4233 }
 0x8db   :  { %v1127_v30 = vmul.f32 %v4234_v14, %v4230_v23 }
 0x8dd   :  { %3983 = vmatprep.mubr.msk.f32.mxu1 %vm214_vm1, %v1127_v30 }
 0x8de   :  { %3984 = vmatmul.mubr.msk.f32.vlgmr.msra.gmra.mxu1 %vm214_vm1, %v1128_v31 }
 0x8df   :  { %3987 = vmatpush3.xpose.msk.msra.mxu1 %vm214_vm1, %v1223_v20  ;;  %3990 = vmatprep.mubr.msk.f32.mxu1 %vm214_vm1, %v1217_v32 }
 0x8e0   :  { %3988 = vmatprep.subr.msk.mxu1 %vm214_vm1, %v1221_v33 }
 0x8e3   :  { %3989 = vmatpush3.xpose.msk.msra.mxu1 %vm214_vm1, %v1221_v33 }
 0x8e4   :  { %4007 = vmatprep.subr.mxu1 %v1013_v37 }
 0x8e6   :  { %3991 = vmatmul.mubr.msk.f32.vlgmr.msra.gmra.mxu1 %vm214_vm1, %v1219_v34 }
 0x8e7   :  { %4008 = vmatpush3.msra.mxu1 %v1013_v37 }
 0x8e8   :  { %4009 = vmatprep.subr.mxu1 %v1012_v40 }
 0x8e9   :  { %4010 = vmatpush3.msra.mxu1 %v1012_v40 }
 0x99e   :  { %v3985_v43 = vpop.f32.mrf.mxu1 }
 0x9a0   :  { %v1207_v45 = vpop.f32.mrf.mxu1 }
 0x9a1   :  { %4011 = vmatprep.mubr.msk.f32.mxu1 %vm214_vm1, %v1207_v45 }
 0x9a2   :  { %4012 = vmatmul.mubr.msk.f32.vlgmr.msra.gmra.mxu1 %vm214_vm1, %v3985_v43 }
 0x9a6   :  { %v3992_v47 = vpop.f32.mrf.mxu1 }
 0x9a7   :  { %v1308_v49 = vmul.f32 0.25, %v3992_v47 }
 0x9a8   :  { %v1298_v50 = vpop.f32.mrf.mxu1 }
 0x9a9   :  { %v1307_v51 = vmul.f32 0.25, %v1298_v50  ;;  %v1310_v52 = vsel %vm4643_vm2, -1e+30, %v1308_v49 }
 0x9aa   :  { %v1314_v53 = vsel %vm214_vm1, %v1310_v52, -inf }
 0x9ab   :  { %1315 = vmax.xlane.f32.xlu0 %v1314_v53  ;;  %v1309_v54 = vsel %vm4649_vm3, -1e+30, %v1307_v51  ;;  %v1631_v53 = vld [vmem:[%s5106_s9 + $0x8] sm:$0xff] }
 0x9ac   :  { %v1311_v55 = vsel %vm214_vm1, %v1309_v54, -inf }
 0x9ad   :  { %1312 = vmax.xlane.f32.xlu1 %v1311_v55  ;;  %v1728_v55 = vld [vmem:[%s5107_s10 + $0x38] sm:$0xff] }
 0x9ae   :  { %4025 = vmatprep.subr.mxu1 %v1728_v55 }
 0x9af   :  { %4026 = vmatpush3.msra.mxu1 %v1728_v55 }
 0xa34   :  { %v1316_v56 = vpop.xlane.xlu0 %1315 }
 0xa35   :  { %v1318_v57 = vsub.f32 %v1310_v52, %v1316_v56  ;;  %v1632_v52 = vld [vmem:[%s5106_s9 + $0x10] sm:$0xff] }
 0xa36   :  { %v1313_v58 = vpop.xlane.xlu1 %1312  ;;  %v1727_v56 = vld [vmem:[%s5107_s10 + $0x30] sm:$0xff] }
 0xa37   :  { %v1321_v17 = vmul.f32 1.442695, %v1318_v57  ;;  %v1317_v59 = vsub.f32 %v1309_v54, %v1313_v58  ;;  %v1630_v54 = vld [vmem:[%s5106_s9] sm:$0xff]  ;;  %v1726_v57 = vld [vmem:[%s5107_s10 + $0x28] sm:$0xff]  ;;  %4027 = vmatprep.subr.mxu1 %v1727_v56 }
 0xa38   :  { %4028 = vmatpush3.msra.mxu1 %v1727_v56  ;;  %v1725_v58 = vld [vmem:[%s5107_s10 + $0x20] sm:$0xff] }
 0xa39   :  { %4235 = vpow2.f32 %v1321_v17  ;;  %v1319_v16 = vmul.f32 1.442695, %v1317_v59  ;;  %4029 = vmatprep.subr.mxu1 %v1726_v57 }
 0xa3a   :  { %4030 = vmatpush3.msra.mxu1 %v1726_v57 }
 0xa3b   :  { %4237 = vpow2.f32 %v1319_v16  ;;  %4031 = vmatprep.subr.mxu1 %v1725_v58 }
 0xa3c   :  { %4032 = vmatpush3.msra.mxu1 %v1725_v58 }
 0xa46   :  { %v4236_v60 = vpop.eup %4235 }
 0xa47   :  { %v1326_v62 = vsel %vm214_vm1, %v4236_v60, 0.0 }
 0xa48   :  { %v4238_v63 = vpop.eup %4237  ;;  %1327 = vadd.xlane.f32.xlu1 %v1326_v62 }
 0xa49   :  { %v1323_v0 = vsel %vm214_vm1, %v4238_v63, 0.0 }
 0xa4a   :  { %1324 = vadd.xlane.f32.xlu0 %v1323_v0  ;;  %v1618_v0 = vsub.s32 4, %v4425_v7 }
 0xa59   :  { %1333 = vrot.lane.b32.xlu1 %v4623_v48, %s4318_s0 }
 0xa60   :  { %1335 = vrot.lane.b32.xlu0 %v4619_v46, %s4318_s0  ;;  %v1014_v46 = vld [vmem:[%s5105_s8 + $0x10] sm:$0xff] }
 0xa62   :  { %v4013_v20 = vpop.f32.mrf.mxu1 }
 0xa64   :  { %v1573_v24 = vpop.f32.mrf.mxu1 }
 0xad1   :  { %v1328_v5 = vpop.xlane.xlu1 %1327 }
 0xad2   :  { %4239 = vrcp.f32 %v1328_v5  ;;  %v1624_v5 = vsub.s32 5, %v4425_v7 }
 0xad3   :  { %v1325_v29 = vpop.xlane.xlu0 %1324 }
 0xad4   :  { %4241 = vrcp.f32 %v1325_v29  ;;  %v1619_v29 = vrot.slane %v4546_v44, %v1618_v0 }
 0xad5   :  { %v1334_v3 = vpop.permute.xlu1 %1333 }
 0xad7   :  { %v1336_v2 = vpop.permute.xlu0 %1335 }
 0xad8   :  { %3993 = vmatprep.subr.mxu0 %v1336_v2 }
 0xad9   :  { %3994 = vmatpush3.msra.mxu0 %v1336_v2 }
 0xada   :  { %3995 = vmatprep.subr.mxu0 %v1334_v3 }
 0xadb   :  { %3996 = vmatpush3.msra.mxu0 %v1334_v3 }
 0xadc   :  { %4000 = vmatprep.subr.mxu0 %v1015_v4 }
 0xadf   :  { %v4240_v6 = vpop.eup %4239 }
 0xae0   :  { %v1332_v13 = vmul.f32 %v4240_v6, %v4236_v60  ;;  %v1625_v6 = vrot.slane %v4546_v44, %v1624_v5 }
 0xae1   :  { %v4242_v48 = vpop.eup %4241 }
 0xae2   :  { %v1331_v11 = vmul.f32 %v4242_v48, %v4238_v63 }
 0xae4   :  { %3997 = vmatprep.mubr.msk.f32.mxu0 %vm214_vm1, %v1331_v11 }
 0xae5   :  { %3998 = vmatmul.mubr.msk.f32.vlgmr.msra.gmra.mxu0 %vm214_vm1, %v1332_v13 }
 0xae6   :  { %4001 = vmatpush3.msra.mxu0 %v1015_v4 }
 0xae7   :  { %4002 = vmatprep.subr.mxu0 %v1014_v46 }
 0xae8   :  { %4003 = vmatpush3.msra.mxu0 %v1014_v46 }
 0xba5   :  { %v3999_v15 = vpop.f32.mrf.mxu0 }
 0xba7   :  { %v1411_v18 = vpop.f32.mrf.mxu0 }
 0xba8   :  { %4004 = vmatprep.mubr.msk.f32.mxu0 %vm214_vm1, %v1411_v18 }
 0xba9   :  { %4005 = vmatmul.mubr.msk.f32.vlgmr.msra.gmra.mxu0 %vm214_vm1, %v3999_v15 }
 0xc69   :  { %v4006_v22 = vpop.f32.mrf.mxu0 }
 0xc6a   :  { %v1579_v23 = vadd.f32 %v4013_v20, %v4006_v22  ;;  %v1723_v22 = vld [vmem:[%s5107_s10 + $0x10] sm:$0xff] }
 0xc6b   :  { %v1492_v25 = vpop.f32.mrf.mxu0 }
 0xc6c   :  { %v1587_v28 = vadd.f32 %v1585_v21, %v1579_v23  ;;  %v1574_v12 = vadd.f32 %v1573_v24, %v1492_v25  ;;  %v1722_v23 = vld [vmem:[%s5107_s10 + $0x8] sm:$0xff]  ;;  %v1721_v24 = vld [vmem:[%s5107_s10] sm:$0xff]  ;;  %v1637_v25 = vrot.slane %v4433_v9, %v4708_v19 }
 0xc6e   :  { %v1586_v14 = vadd.f32 %v1585_v21, %v1574_v12  ;;  %v1589_v30 = vadd.f32 %v1587_v28, %v4611_v42  ;;  %v1724_v21 = vld [vmem:[%s5107_s10 + $0x18] sm:$0xff] }
 0xc6f   :  { %4033 = vmatprep.subr.mxu1 %v1724_v21 }
 0xc70   :  { %v1593_v31 = vsel %vm122_vm0, %v1589_v30, 0.0  ;;  %v1588_v32 = vadd.f32 %v1586_v14, %v4608_v41  ;;  %v1633_v41 = vld [vmem:[%s5106_s9 + $0x18] sm:$0xff]  ;;  %4034 = vmatpush3.msra.mxu1 %v1724_v21 }
 0xc71   :  { %1594 = vadd.xlane.f32.xlu0 %v1593_v31  ;;  %4014 = vmatprep.subr.mxu0 %v1633_v41 }
 0xc72   :  { %v1590_v33 = vsel %vm122_vm0, %v1588_v32, 0.0  ;;  %4015 = vmatpush3.msra.mxu0 %v1633_v41  ;;  %4035 = vmatprep.subr.mxu1 %v1723_v22 }
 0xc73   :  { %1591 = vadd.xlane.f32.xlu1 %v1590_v33  ;;  %4016 = vmatprep.subr.mxu0 %v1632_v52  ;;  %v1731_v33 = vsub.s32 6, %v4425_v7 }
 0xc74   :  { %4017 = vmatpush3.msra.mxu0 %v1632_v52  ;;  %4036 = vmatpush3.msra.mxu1 %v1723_v22 }
 0xc75   :  { %4018 = vmatprep.subr.mxu0 %v1631_v53  ;;  %4037 = vmatprep.subr.mxu1 %v1722_v23 }
 0xc76   :  { %4019 = vmatpush3.msra.mxu0 %v1631_v53  ;;  %4038 = vmatpush3.msra.mxu1 %v1722_v23 }
 0xc77   :  { %4020 = vmatprep.subr.mxu0 %v1630_v54  ;;  %4039 = vmatprep.subr.mxu1 %v1721_v24 }
 0xc78   :  { %4021 = vmatpush3.msra.mxu0 %v1630_v54  ;;  %4040 = vmatpush3.msra.mxu1 %v1721_v24 }
 0xcfa   :  { %v1595_v34 = vpop.xlane.xlu0 %1594 }
 0xcfb   :  { %v1597_v37 = vmul.f32 0.03125, %v1595_v34  ;;  %v1732_v34 = vrot.slane %v4546_v44, %v1731_v33 }
 0xcfc   :  { %v1592_v40 = vpop.xlane.xlu1 %1591 }
 0xcfd   :  { %v1599_v43 = vsub.f32 %v1589_v30, %v1597_v37  ;;  %v1596_v45 = vmul.f32 0.03125, %v1592_v40 }
 0xcff   :  { %v1598_v47 = vsub.f32 %v1588_v32, %v1596_v45  ;;  %v1601_v49 = vmul.f32 %v1599_v43, %v1599_v43 }
 0xd01   :  { %v1605_v50 = vsel %vm122_vm0, %v1601_v49, 0.0  ;;  %v1600_v51 = vmul.f32 %v1598_v47, %v1598_v47 }
 0xd02   :  { %1606 = vadd.xlane.f32.xlu1 %v1605_v50 }
 0xd03   :  { %v1602_v42 = vsel %vm122_vm0, %v1600_v51, 0.0 }
 0xd04   :  { %1603 = vadd.xlane.f32.xlu0 %v1602_v42 }
 0xd8b   :  { %v1607_v17 = vpop.xlane.xlu1 %1606 }
 0xd8c   :  { %v1609_v59 = vmul.f32 0.03125, %v1607_v17  ;;  %v3661_v17 = vld [vmem:[%s5101_s4 + $0x38] sm:$0xff] }
 0xd8d   :  { %v1604_v16 = vpop.xlane.xlu0 %1603  ;;  %4044 = vmatprep.subr.mxu0 %v3661_v17 }
 0xd8e   :  { %v1611_v60 = vadd.f32 1e-05, %v1609_v59  ;;  %v1608_v62 = vmul.f32 0.03125, %v1604_v16  ;;  %v3660_v59 = vld [vmem:[%s5101_s4 + $0x30] sm:$0xff]  ;;  %v3659_v16 = vld [vmem:[%s5101_s4 + $0x28] sm:$0xff] }
 0xd90   :  { %4243 = vrsqrt.f32 %v1611_v60  ;;  %v1610_v63 = vadd.f32 1e-05, %v1608_v62  ;;  %v3658_v60 = vld [vmem:[%s5101_s4 + $0x20] sm:$0xff] }
 0xd92   :  { %4245 = vrsqrt.f32 %v1610_v63 }
 0xd9d   :  { %v4244_v2 = vpop.eup %4243 }
 0xd9e   :  { %v1615_v3 = vmul.f32 %v4244_v2, %v1599_v43 }
 0xd9f   :  { %v4246_v4 = vpop.eup %4245 }
 0xda0   :  { %v1614_v48 = vmul.f32 %v4246_v4, %v1598_v47  ;;  %v1621_v11 = vmul.f32 %v1619_v29, %v1615_v3 }
 0xda2   :  { %v1620_v13 = vmul.f32 %v1619_v29, %v1614_v48  ;;  %v1627_v46 = vadd.f32 %v1625_v6, %v1621_v11 }
 0xda4   :  { %v1626_v15 = vadd.f32 %v1625_v6, %v1620_v13  ;;  %v1629_v20 = vmul.f32 %v1627_v46, %v4605_v39  ;;  %v1845_v6 = vsub.s32 7, %v4425_v7 }
 0xda6   :  { %v1628_v18 = vmul.f32 %v1626_v15, %v4603_v35  ;;  %v1846_v48 = vrot.slane %v4546_v44, %v1845_v6  ;;  %v3654_v15 = vld [vmem:[%s5108_s11 + $0x8] ss:$0 sm:$0xff]  ;;  %v4810_v44 = vld [vmem:[%s5109_s12 + $0x4] sm:$0xf] }
 0xda8   :  { %4022 = vmatprep.mubr.msk.f32.mxu0 %vm122_vm0, %v1628_v18 }
 0xda9   :  { %4023 = vmatmul.mubr.msk.f32.vlgmr.msra.gmra.mxu0 %vm122_vm0, %v1629_v20 }
 0xdaa   :  { %4045 = vmatpush3.msra.mxu0 %v3661_v17 }
 0xdab   :  { %4046 = vmatprep.subr.mxu0 %v3660_v59 }
 0xdac   :  { %4047 = vmatpush3.msra.mxu0 %v3660_v59 }
 0xdad   :  { %4048 = vmatprep.subr.mxu0 %v3659_v16 }
 0xdae   :  { %4049 = vmatpush3.msra.mxu0 %v3659_v16 }
 0xdaf   :  { %4050 = vmatprep.subr.mxu0 %v3658_v60 }
 0xdb0   :  { %4051 = vmatpush3.msra.mxu0 %v3658_v60 }
 0xe69   :  { %v4024_v28 = vpop.f32.mrf.mxu0 }
 0xe6a   :  { %v1716_v12 = vadd.f32 %v4024_v28, %v1637_v25  ;;  %v1870_v28 = vrot.slane %v4810_v44, %v4428_v8 }
 0xe6b   :  { %v1710_v14 = vpop.f32.mrf.mxu0 }
 0xe6c   :  { %v1711_v30 = vadd.f32 %v1710_v14, %v1637_v25  ;;  %v1720_v32 = vmax.f32 %v1716_v12, 0.0 }
 0xe6e   :  { %v1719_v31 = vmax.f32 %v1711_v30, 0.0 }
 0xe70   :  { %4041 = vmatprep.mubr.msk.f32.mxu1 %vm1733_vm4, %v1719_v31 }
 0xe71   :  { %4042 = vmatmul.mubr.msk.f32.vlgmr.msra.gmra.mxu1 %vm1733_vm4, %v1720_v32 }
 0xf31   :  { %v4043_v37 = vpop.f32.mrf.mxu1 }
 0xf32   :  { %v1812_v40 = vadd.f32 %v4043_v37, %v1732_v34 }
 0xf33   :  { %v1806_v9 = vpop.f32.mrf.mxu1 }
 0xf34   :  { %v1807_v43 = vadd.f32 %v1806_v9, %v1732_v34  ;;  %v1816_v45 = vadd.f32 %v1812_v40, %v1629_v20 }
 0xf36   :  { %v1820_v47 = vsel %vm122_vm0, %v1816_v45, 0.0  ;;  %v1815_v49 = vadd.f32 %v1807_v43, %v1628_v18 }
 0xf37   :  { %1821 = vadd.xlane.f32.xlu1 %v1820_v47 }
 0xf38   :  { %v1817_v50 = vsel %vm122_vm0, %v1815_v49, 0.0 }
 0xf39   :  { %1818 = vadd.xlane.f32.xlu0 %v1817_v50 }
 0xfc0   :  { %v1822_v51 = vpop.xlane.xlu1 %1821 }
 0xfc1   :  { %v1824_v42 = vmul.f32 0.03125, %v1822_v51 }
 0xfc2   :  { %v1819_v41 = vpop.xlane.xlu0 %1818 }
 0xfc3   :  { %v1826_v52 = vsub.f32 %v1816_v45, %v1824_v42  ;;  %v1823_v53 = vmul.f32 0.03125, %v1819_v41 }
 0xfc5   :  { %v1825_v54 = vsub.f32 %v1815_v49, %v1823_v53  ;;  %v1828_v55 = vmul.f32 %v1826_v52, %v1826_v52 }
 0xfc7   :  { %v1832_v56 = vsel %vm122_vm0, %v1828_v55, 0.0  ;;  %v1827_v57 = vmul.f32 %v1825_v54, %v1825_v54 }
 0xfc8   :  { %1833 = vadd.xlane.f32.xlu1 %v1832_v56 }
 0xfc9   :  { %v1829_v58 = vsel %vm122_vm0, %v1827_v57, 0.0 }
 0xfca   :  { %1830 = vadd.xlane.f32.xlu0 %v1829_v58 }
0x1051   :  { %v1834_v62 = vpop.xlane.xlu1 %1833 }
0x1052   :  { %v1836_v63 = vmul.f32 0.03125, %v1834_v62 }
0x1053   :  { %v1831_v29 = vpop.xlane.xlu0 %1830 }
0x1054   :  { %v1838_v2 = vadd.f32 1e-05, %v1836_v63  ;;  %v1835_v3 = vmul.f32 0.03125, %v1831_v29 }
0x1056   :  { %4247 = vrsqrt.f32 %v1838_v2  ;;  %v1837_v4 = vadd.f32 1e-05, %v1835_v3 }
0x1058   :  { %4249 = vrsqrt.f32 %v1837_v4 }
0x1063   :  { %v4248_v11 = vpop.eup %4247 }
0x1064   :  { %v1842_v13 = vmul.f32 %v4248_v11, %v1826_v52 }
0x1065   :  { %v4250_v46 = vpop.eup %4249 }
0x1066   :  { %v1841_v18 = vmul.f32 %v4250_v46, %v1825_v54  ;;  %v1848_v20 = vmul.f32 %v1846_v48, %v1842_v13  ;;  %v3665_v13 = vld [vmem:[%s5102_s5 + $0x28] sm:$0xff]  ;;  %v3664_v46 = vld [vmem:[%s5102_s5 + $0x20] sm:$0xff] }
0x1068   :  { %v1847_v21 = vmul.f32 %v1846_v48, %v1841_v18  ;;  %v1854_v22 = vadd.f32 %v3654_v15, %v1848_v20 }
0x106a   :  { %v1853_v23 = vadd.f32 %v3654_v15, %v1847_v21  ;;  %v4801_v25 = vmul.f32 %v1854_v22, %v4605_v39 }
0x106c   :  { %v4798_v24 = vmul.f32 %v1853_v23, %v4603_v35 }
0x106e   :  { %4052 = vmatprep.mubr.msk.f32.mxu0 %vm122_vm0, %v4798_v24 }
0x106f   :  { %4053 = vmatmul.mubr.msk.f32.vlgmr.msra.gmra.mxu0 %vm122_vm0, %v4801_v25 }
0x112f   :  { %v4054_v12 = vpop.f32.mrf.mxu0 }
0x1130   :  { %v4814_v14 = vadd.f32 %v4054_v12, %v1870_v28 }
0x1131   :  { %v1943_v30 = vpop.f32.mrf.mxu0 }
0x1132   :  { %v4816_v31 = vadd.f32 %v1943_v30, %v1870_v28  ;;  %1961 = vrot.lane.b32.xlu0 %v4814_v14, %s4319_s22 }
0x1134   :  { %1959 = vrot.lane.b32.xlu1 %v4816_v31, %s4319_s22  ;;  %4059 = vmatprep.mubr.msk.f32.mxu0 %vm214_vm1, %v4816_v31 }
0x11a4   :  { %v1962_v32 = vpop.permute.xlu0 %1961 }
0x11a5   :  { %4055 = vmatprep.subr.msk.mxu0 %vm214_vm1, %v1962_v32 }
0x11a6   :  { %4056 = vmatpush3.xpose.msk.msra.mxu0 %vm214_vm1, %v1962_v32  ;;  %v1960_v34 = vpop.permute.xlu1 %1959 }
0x11a7   :  { %4057 = vmatprep.subr.msk.mxu0 %vm214_vm1, %v1960_v34 }
0x11aa   :  { %4058 = vmatpush3.xpose.msk.msra.mxu0 %vm214_vm1, %v1960_v34 }
0x11ad   :  { %4060 = vmatmul.mubr.msk.f32.vlgmr.msra.gmra.mxu0 %vm214_vm1, %v4814_v14 }
0x126d   :  { %v4061_v37 = vpop.f32.mrf.mxu0 }
0x126e   :  { %v2047_v40 = vmul.f32 0.25, %v4061_v37 }
0x126f   :  { %v2037_v9 = vpop.f32.mrf.mxu0 }
0x1270   :  { %v2046_v43 = vmul.f32 0.25, %v2037_v9  ;;  %v2049_v45 = vsel %vm4491_vm10, -1e+30, %v2047_v40 }
0x1271   :  { %v2053_v47 = vsel %vm214_vm1, %v2049_v45, -inf }
0x1272   :  { %2054 = vmax.xlane.f32.xlu0 %v2053_v47  ;;  %v2048_v49 = vsel %vm4495_vm11, -1e+30, %v2046_v43 }
0x1273   :  { %v2050_v50 = vsel %vm214_vm1, %v2048_v49, -inf }
0x1274   :  { %2051 = vmax.xlane.f32.xlu1 %v2050_v50 }
0x12fb   :  { %v2055_v51 = vpop.xlane.xlu0 %2054 }
0x12fc   :  { %v2057_v42 = vsub.f32 %v2049_v45, %v2055_v51 }
0x12fd   :  { %v2052_v41 = vpop.xlane.xlu1 %2051 }
0x12fe   :  { %v2060_v52 = vmul.f32 1.442695, %v2057_v42  ;;  %v2056_v53 = vsub.f32 %v2048_v49, %v2052_v41  ;;  %v3667_v41 = vld [vmem:[%s5102_s5 + $0x38] sm:$0xff] }
0x1300   :  { %4251 = vpow2.f32 %v2060_v52  ;;  %v2058_v54 = vmul.f32 1.442695, %v2056_v53 }
0x1302   :  { %4253 = vpow2.f32 %v2058_v54 }
0x130d   :  { %v4252_v55 = vpop.eup %4251 }
0x130e   :  { %v2065_v56 = vsel %vm214_vm1, %v4252_v55, 0.0 }
0x130f   :  { %v4254_v57 = vpop.eup %4253  ;;  %2066 = vadd.xlane.f32.xlu1 %v2065_v56 }
0x1310   :  { %v2062_v58 = vsel %vm214_vm1, %v4254_v57, 0.0 }
0x1311   :  { %2063 = vadd.xlane.f32.xlu0 %v2062_v58 }
0x1320   :  { %2072 = vrot.lane.b32.xlu1 %v4816_v31, %s4323_s3 }
0x1324   :  { %2165 = vrot.lane.b32.xlu1 %v4814_v14, %s4318_s0 }
0x1327   :  { %2074 = vrot.lane.b32.xlu0 %v4814_v14, %s4323_s3 }
0x1328   :  { %2159 = vrot.lane.b32.xlu1 %v4816_v31, %s4321_s23 }
0x132b   :  { %2163 = vrot.lane.b32.xlu0 %v4816_v31, %s4318_s0 }
0x132f   :  { %2161 = vrot.lane.b32.xlu0 %v4814_v14, %s4321_s23 }
0x1398   :  { %v2067_v17 = vpop.xlane.xlu1 %2066 }
0x1399   :  { %4255 = vrcp.f32 %v2067_v17 }
0x139a   :  { %v2064_v59 = vpop.xlane.xlu0 %2063 }
0x139b   :  { %4257 = vrcp.f32 %v2064_v59 }
0x139c   :  { %v2073_v16 = vpop.permute.xlu1 %2072 }
0x139e   :  { %v2075_v60 = vpop.permute.xlu0 %2074 }
0x139f   :  { %4062 = vmatprep.subr.mxu1 %v2075_v60 }
0x13a0   :  { %4063 = vmatpush3.msra.mxu1 %v2075_v60  ;;  %v2166_v62 = vpop.permute.xlu1 %2165 }
0x13a1   :  { %4064 = vmatprep.subr.mxu1 %v2073_v16 }
0x13a2   :  { %4065 = vmatpush3.msra.mxu1 %v2073_v16  ;;  %v2164_v48 = vpop.permute.xlu0 %2163 }
0x13a3   :  { %4069 = vmatprep.subr.msk.mxu1 %vm214_vm1, %v2166_v62 }
0x13a4   :  { %v2160_v4 = vpop.permute.xlu1 %2159 }
0x13a6   :  { %v4256_v63 = vpop.eup %4255  ;;  %v2162_v11 = vpop.permute.xlu0 %2161 }
0x13a7   :  { %v2071_v3 = vmul.f32 %v4256_v63, %v4252_v55 }
0x13a8   :  { %v4258_v29 = vpop.eup %4257 }
0x13a9   :  { %v2070_v2 = vmul.f32 %v4258_v29, %v4254_v57  ;;  %v4893_v57 = vld [vmem:[%s5108_s11 + $0x10] sm:$0xff] }
0x13aa   :  { %v2528_v17 = vrot.slane %v4893_v57, %v4428_v8 }
0x13ab   :  { %4066 = vmatprep.mubr.msk.f32.mxu1 %vm214_vm1, %v2070_v2 }
0x13ac   :  { %4067 = vmatmul.mubr.msk.f32.vlgmr.msra.gmra.mxu1 %vm214_vm1, %v2071_v3 }
0x13ad   :  { %4070 = vmatpush3.xpose.msk.msra.mxu1 %vm214_vm1, %v2166_v62  ;;  %4073 = vmatprep.mubr.msk.f32.mxu1 %vm214_vm1, %v2160_v4 }
0x13ae   :  { %4071 = vmatprep.subr.msk.mxu1 %vm214_vm1, %v2164_v48 }
0x13b1   :  { %4072 = vmatpush3.xpose.msk.msra.mxu1 %vm214_vm1, %v2164_v48 }
0x13b2   :  { %4090 = vmatprep.subr.mxu1 %v3665_v13 }
0x13b4   :  { %4074 = vmatmul.mubr.msk.f32.vlgmr.msra.gmra.mxu1 %vm214_vm1, %v2162_v11 }
0x13b5   :  { %4091 = vmatpush3.msra.mxu1 %v3665_v13 }
0x13b6   :  { %4092 = vmatprep.subr.mxu1 %v3664_v46 }
0x13b7   :  { %4093 = vmatpush3.msra.mxu1 %v3664_v46 }
0x146c   :  { %v4068_v15 = vpop.f32.mrf.mxu1 }
0x146e   :  { %v2150_v18 = vpop.f32.mrf.mxu1 }
0x146f   :  { %4094 = vmatprep.mubr.msk.f32.mxu1 %vm214_vm1, %v2150_v18 }
0x1470   :  { %4095 = vmatmul.mubr.msk.f32.vlgmr.msra.gmra.mxu1 %vm214_vm1, %v4068_v15 }
0x1471   :  { %4116 = vmatprep.mubr.msk.f32.mxu1 %vm122_vm0, %v4573_v10 }
0x1474   :  { %v4075_v20 = vpop.f32.mrf.mxu1 }
0x1475   :  { %v2251_v21 = vmul.f32 0.25, %v4075_v20 }
0x1476   :  { %v2241_v22 = vpop.f32.mrf.mxu1 }
0x1477   :  { %v2250_v23 = vmul.f32 0.25, %v2241_v22  ;;  %v2253_v28 = vsel %vm4491_vm10, -1e+30, %v2251_v21 }
0x1478   :  { %v2257_v12 = vsel %vm214_vm1, %v2253_v28, -inf }
0x1479   :  { %2258 = vmax.xlane.f32.xlu0 %v2257_v12  ;;  %v2252_v30 = vsel %vm4495_vm11, -1e+30, %v2250_v23  ;;  %v3691_v12 = vld [vmem:[%s5104_s7 + $0x28] sm:$0xff] }
0x147a   :  { %v2254_v32 = vsel %vm214_vm1, %v2252_v30, -inf }
0x147b   :  { %2255 = vmax.xlane.f32.xlu1 %v2254_v32  ;;  %v3687_v32 = vld [vmem:[%s5103_s6 + $0x38] sm:$0xff] }
0x1502   :  { %v2259_v34 = vpop.xlane.xlu0 %2258 }
0x1503   :  { %v2261_v37 = vsub.f32 %v2253_v28, %v2259_v34  ;;  %v3692_v28 = vld [vmem:[%s5104_s7 + $0x30] sm:$0xff] }
0x1504   :  { %v2256_v40 = vpop.xlane.xlu1 %2255  ;;  %v3686_v34 = vld [vmem:[%s5103_s6 + $0x30] sm:$0xff] }
0x1505   :  { %v2264_v10 = vmul.f32 1.442695, %v2261_v37  ;;  %v2260_v9 = vsub.f32 %v2252_v30, %v2256_v40  ;;  %v3690_v30 = vld [vmem:[%s5104_s7 + $0x20] sm:$0xff]  ;;  %v4295_v37 = vld [vmem:[%s5098_s1 + $0x8] sm:$0xff] }
0x1506   :  { %v3685_v40 = vld [vmem:[%s5103_s6 + $0x28] sm:$0xff] }
0x1507   :  { %4259 = vpow2.f32 %v2264_v10  ;;  %v2262_v43 = vmul.f32 1.442695, %v2260_v9  ;;  %v3684_v10 = vld [vmem:[%s5103_s6 + $0x20] sm:$0xff] }
0x1509   :  { %4261 = vpow2.f32 %v2262_v43 }
0x1514   :  { %v4260_v45 = vpop.eup %4259 }
0x1515   :  { %v2269_v36 = vsel %vm214_vm1, %v4260_v45, 0.0 }
0x1516   :  { %v4262_v47 = vpop.eup %4261  ;;  %2270 = vadd.xlane.f32.xlu1 %v2269_v36 }
0x1517   :  { %v2266_v49 = vsel %vm214_vm1, %v4262_v47, 0.0 }
0x1518   :  { %2267 = vadd.xlane.f32.xlu0 %v2266_v49 }
0x1527   :  { %2276 = vrot.lane.b32.xlu1 %v4816_v31, %s4324_s29 }
0x152e   :  { %2278 = vrot.lane.b32.xlu0 %v4814_v14, %s4324_s29  ;;  %v3666_v14 = vld [vmem:[%s5102_s5 + $0x30] sm:$0xff] }
0x1530   :  { %v4096_v58 = vpop.f32.mrf.mxu1 }
0x1532   :  { %v2516_v60 = vpop.f32.mrf.mxu1 }
0x159f   :  { %v2271_v38 = vpop.xlane.xlu1 %2270 }
0x15a0   :  { %4263 = vrcp.f32 %v2271_v38  ;;  %v2562_v38 = vrot.slane %v4893_v57, %v4594_v26 }
0x15a1   :  { %v2268_v50 = vpop.xlane.xlu0 %2267 }
0x15a2   :  { %4265 = vrcp.f32 %v2268_v50 }
0x15a3   :  { %v2277_v42 = vpop.permute.xlu1 %2276 }
0x15a5   :  { %v2279_v51 = vpop.permute.xlu0 %2278 }
0x15a6   :  { %4076 = vmatprep.subr.mxu0 %v2279_v51 }
0x15a7   :  { %4077 = vmatpush3.msra.mxu0 %v2279_v51 }
0x15a8   :  { %4078 = vmatprep.subr.mxu0 %v2277_v42 }
0x15a9   :  { %4079 = vmatpush3.msra.mxu0 %v2277_v42 }
0x15aa   :  { %4083 = vmatprep.subr.mxu0 %v3667_v41 }
0x15ad   :  { %v4264_v52 = vpop.eup %4263 }
0x15ae   :  { %v2275_v54 = vmul.f32 %v4264_v52, %v4260_v45 }
0x15af   :  { %v4266_v31 = vpop.eup %4265 }
0x15b0   :  { %v2274_v53 = vmul.f32 %v4266_v31, %v4262_v47 }
0x15b2   :  { %4080 = vmatprep.mubr.msk.f32.mxu0 %vm214_vm1, %v2274_v53 }
0x15b3   :  { %4081 = vmatmul.mubr.msk.f32.vlgmr.msra.gmra.mxu0 %vm214_vm1, %v2275_v54 }
0x15b4   :  { %4084 = vmatpush3.msra.mxu0 %v3667_v41  ;;  %v2568_v41 = vrot.slane %v4893_v57, %v4597_v27 }
0x15b5   :  { %4085 = vmatprep.subr.mxu0 %v3666_v14 }
0x15b6   :  { %4086 = vmatpush3.msra.mxu0 %v3666_v14 }
0x15b7   :  { %4097 = vmatprep.subr.mxu0 %v3687_v32 }
0x1673   :  { %v4082_v55 = vpop.f32.mrf.mxu0 }
0x1675   :  { %v2354_v56 = vpop.f32.mrf.mxu0 }
0x1676   :  { %4087 = vmatprep.mubr.msk.f32.mxu0 %vm214_vm1, %v2354_v56 }
0x1677   :  { %4088 = vmatmul.mubr.msk.f32.vlgmr.msra.gmra.mxu0 %vm214_vm1, %v4082_v55 }
0x1678   :  { %4098 = vmatpush3.msra.mxu0 %v3687_v32 }
0x1679   :  { %4099 = vmatprep.subr.mxu0 %v3686_v34 }
0x167a   :  { %4100 = vmatpush3.msra.mxu0 %v3686_v34 }
0x167b   :  { %4101 = vmatprep.subr.mxu0 %v3685_v40 }
0x167c   :  { %4102 = vmatpush3.msra.mxu0 %v3685_v40 }
0x167d   :  { %4103 = vmatprep.subr.mxu0 %v3684_v10 }
0x167e   :  { %4104 = vmatpush3.msra.mxu0 %v3684_v10 }
0x1737   :  { %v4089_v59 = vpop.f32.mrf.mxu0 }
0x1738   :  { %v2522_v16 = vadd.f32 %v4096_v58, %v4089_v59  ;;  %v2671_v58 = vrot.slane %v4810_v44, %v4597_v27  ;;  %v2581_v27 = vrot.slane %v4810_v44, %v4594_v26 }
0x1739   :  { %v2435_v62 = vpop.f32.mrf.mxu0 }
0x173a   :  { %v2530_v63 = vadd.f32 %v2528_v17, %v2522_v16  ;;  %v2517_v29 = vadd.f32 %v2516_v60, %v2435_v62 }
0x173c   :  { %v2529_v2 = vadd.f32 %v2528_v17, %v2517_v29  ;;  %v2532_v3 = vadd.f32 %v2530_v63, %v4801_v25 }
0x173e   :  { %v2536_v4 = vsel %vm122_vm0, %v2532_v3, 0.0  ;;  %v2531_v48 = vadd.f32 %v2529_v2, %v4798_v24  ;;  %v3693_v24 = vld [vmem:[%s5104_s7 + $0x38] sm:$0xff] }
0x173f   :  { %2537 = vadd.xlane.f32.xlu0 %v2536_v4  ;;  %4108 = vmatprep.subr.mxu1 %v3693_v24 }
0x1740   :  { %v2533_v11 = vsel %vm122_vm0, %v2531_v48, 0.0  ;;  %4109 = vmatpush3.msra.mxu1 %v3693_v24 }
0x1741   :  { %2534 = vadd.xlane.f32.xlu1 %v2533_v11  ;;  %4110 = vmatprep.subr.mxu1 %v3692_v28 }
0x1742   :  { %4111 = vmatpush3.msra.mxu1 %v3692_v28 }
0x1743   :  { %4112 = vmatprep.subr.mxu1 %v3691_v12 }
0x1744   :  { %4113 = vmatpush3.msra.mxu1 %v3691_v12 }
0x1745   :  { %4114 = vmatprep.subr.mxu1 %v3690_v30 }
0x1746   :  { %4115 = vmatpush3.msra.mxu1 %v3690_v30 }
0x1747   :  { %4117 = vmatmul.mubr.msk.f32.vlgmr.msra.gmra.mxu1 %vm122_vm0, %v4295_v37 }
0x17c8   :  { %v2538_v13 = vpop.xlane.xlu0 %2537 }
0x17c9   :  { %v2540_v46 = vmul.f32 0.03125, %v2538_v13 }
0x17ca   :  { %v2535_v8 = vpop.xlane.xlu1 %2534 }
0x17cb   :  { %v2542_v15 = vsub.f32 %v2532_v3, %v2540_v46  ;;  %v2539_v18 = vmul.f32 0.03125, %v2535_v8 }
0x17cd   :  { %v2541_v20 = vsub.f32 %v2531_v48, %v2539_v18  ;;  %v2544_v21 = vmul.f32 %v2542_v15, %v2542_v15 }
0x17cf   :  { %v2548_v22 = vsel %vm122_vm0, %v2544_v21, 0.0  ;;  %v2543_v23 = vmul.f32 %v2541_v20, %v2541_v20 }
0x17d0   :  { %2549 = vadd.xlane.f32.xlu1 %v2548_v22 }
0x17d1   :  { %v2545_v25 = vsel %vm122_vm0, %v2543_v23, 0.0 }
0x17d2   :  { %2546 = vadd.xlane.f32.xlu0 %v2545_v25 }
0x1807   :  { %v4118_v17 = vpop.f32.mrf.mxu1 }
0x1808   :  { %v4947_v59 = vadd.f32 %v4118_v17, %v2671_v58 }
0x1809   :  { %v2738_v16 = vpop.f32.mrf.mxu1 }
0x180a   :  { %4119 = vmatprep.subr.msk.mxu0 %vm214_vm1, %v4947_v59  ;;  %v4951_v60 = vadd.f32 %v2738_v16, %v2671_v58 }
0x1859   :  { %v2550_v9 = vpop.xlane.xlu1 %2549 }
0x185a   :  { %v2552_v43 = vmul.f32 0.03125, %v2550_v9 }
0x185b   :  { %v2547_v45 = vpop.xlane.xlu0 %2546 }
0x185c   :  { %v2554_v36 = vadd.f32 1e-05, %v2552_v43  ;;  %v2551_v47 = vmul.f32 0.03125, %v2547_v45 }
0x185e   :  { %4267 = vrsqrt.f32 %v2554_v36  ;;  %v2553_v49 = vadd.f32 1e-05, %v2551_v47 }
0x1860   :  { %4269 = vrsqrt.f32 %v2553_v49 }
0x186b   :  { %v4268_v50 = vpop.eup %4267 }
0x186c   :  { %v2558_v51 = vmul.f32 %v4268_v50, %v2542_v15  ;;  %v3696_v50 = vld [vmem:[%s5105_s8 + $0x20] sm:$0xff] }
0x186d   :  { %v4270_v42 = vpop.eup %4269 }
0x186e   :  { %v2557_v52 = vmul.f32 %v4270_v42, %v2541_v20  ;;  %v2564_v31 = vmul.f32 %v2562_v38, %v2558_v51 }
0x1870   :  { %v2563_v53 = vmul.f32 %v2562_v38, %v2557_v52  ;;  %v2570_v54 = vadd.f32 %v2568_v41, %v2564_v31  ;;  %v3697_v38 = vld [vmem:[%s5105_s8 + $0x28] sm:$0xff] }
0x1872   :  { %v2569_v14 = vadd.f32 %v2568_v41, %v2563_v53  ;;  %v4939_v56 = vmul.f32 %v2570_v54, %v4605_v39 }
0x1874   :  { %v4936_v55 = vmul.f32 %v2569_v14, %v4603_v35 }
0x1876   :  { %4105 = vmatprep.mubr.msk.f32.mxu0 %vm122_vm0, %v4936_v55 }
0x1877   :  { %4106 = vmatmul.mubr.msk.f32.vlgmr.msra.gmra.mxu0 %vm122_vm0, %v4939_v56 }
0x1878   :  { %4120 = vmatpush3.xpose.msk.msra.mxu0 %vm214_vm1, %v4947_v59 }
0x1879   :  { %4121 = vmatprep.subr.msk.mxu0 %vm214_vm1, %v4951_v60 }
0x187c   :  { %4122 = vmatpush3.xpose.msk.msra.mxu0 %vm214_vm1, %v4951_v60 }
0x1937   :  { %v4107_v62 = vpop.f32.mrf.mxu0 }
0x1938   :  { %v2660_v2 = vadd.f32 %v4107_v62, %v2581_v27 }
0x1939   :  { %v2654_v63 = vpop.f32.mrf.mxu0 }
0x193a   :  { %v2655_v29 = vadd.f32 %v2654_v63, %v2581_v27 }
0x193c   :  { %4123 = vmatprep.mubr.msk.f32.mxu0 %vm214_vm1, %v2655_v29 }
0x193d   :  { %4124 = vmatmul.mubr.msk.f32.vlgmr.msra.gmra.mxu0 %vm214_vm1, %v2660_v2 }
0x19fd   :  { %v4125_v3 = vpop.f32.mrf.mxu0 }
0x19fe   :  { %v2840_v4 = vmul.f32 0.25, %v4125_v3 }
0x19ff   :  { %v2830_v48 = vpop.f32.mrf.mxu0 }
0x1a00   :  { %v2839_v11 = vmul.f32 0.25, %v2830_v48  ;;  %v2842_v13 = vsel %vm4643_vm2, -1e+30, %v2840_v4 }
0x1a01   :  { %v2846_v46 = vsel %vm214_vm1, %v2842_v13, -inf }
0x1a02   :  { %2847 = vmax.xlane.f32.xlu1 %v2846_v46  ;;  %v2841_v26 = vsel %vm4649_vm3, -1e+30, %v2839_v11 }
0x1a03   :  { %v2843_v8 = vsel %vm214_vm1, %v2841_v26, -inf }
0x1a04   :  { %2844 = vmax.xlane.f32.xlu0 %v2843_v8 }
0x1a8b   :  { %v2848_v15 = vpop.xlane.xlu1 %2847 }
0x1a8c   :  { %v2850_v18 = vsub.f32 %v2842_v13, %v2848_v15 }
0x1a8d   :  { %v2845_v20 = vpop.xlane.xlu0 %2844 }
0x1a8e   :  { %v2853_v21 = vmul.f32 1.442695, %v2850_v18  ;;  %v2849_v22 = vsub.f32 %v2841_v26, %v2845_v20  ;;  %v3699_v26 = vld [vmem:[%s5105_s8 + $0x38] sm:$0xff] }
0x1a90   :  { %4271 = vpow2.f32 %v2853_v21  ;;  %v2851_v23 = vmul.f32 1.442695, %v2849_v22 }
0x1a92   :  { %4273 = vpow2.f32 %v2851_v23  ;;  %v3321_v23 = vrot.slane %v4893_v57, %v4708_v19 }
0x1a9d   :  { %v4272_v25 = vpop.eup %4271 }
0x1a9e   :  { %v2858_v24 = vsel %vm214_vm1, %v4272_v25, 0.0 }
0x1a9f   :  { %v4274_v28 = vpop.eup %4273  ;;  %2859 = vadd.xlane.f32.xlu1 %v2858_v24 }
0x1aa0   :  { %v2855_v12 = vsel %vm214_vm1, %v4274_v28, 0.0 }
0x1aa1   :  { %2856 = vadd.xlane.f32.xlu0 %v2855_v12 }
0x1ab0   :  { %2865 = vrot.lane.b32.xlu1 %v4951_v60, %s4319_s22 }
0x1ab4   :  { %2958 = vrot.lane.b32.xlu1 %v4947_v59, %s4321_s23 }
0x1ab7   :  { %2867 = vrot.lane.b32.xlu0 %v4947_v59, %s4319_s22 }
0x1ab8   :  { %2952 = vrot.lane.b32.xlu1 %v2655_v29, %s4321_s23 }
0x1abb   :  { %2956 = vrot.lane.b32.xlu0 %v4951_v60, %s4321_s23 }
0x1abf   :  { %2954 = vrot.lane.b32.xlu0 %v2660_v2, %s4321_s23 }
0x1b28   :  { %v2860_v30 = vpop.xlane.xlu1 %2859 }
0x1b29   :  { %4275 = vrcp.f32 %v2860_v30 }
0x1b2a   :  { %v2857_v32 = vpop.xlane.xlu0 %2856 }
0x1b2b   :  { %4277 = vrcp.f32 %v2857_v32 }
0x1b2c   :  { %v2866_v34 = vpop.permute.xlu1 %2865 }
0x1b2e   :  { %v2868_v37 = vpop.permute.xlu0 %2867 }
0x1b2f   :  { %4126 = vmatprep.subr.mxu1 %v2868_v37 }
0x1b30   :  { %4127 = vmatpush3.msra.mxu1 %v2868_v37  ;;  %v2959_v40 = vpop.permute.xlu1 %2958 }
0x1b31   :  { %4128 = vmatprep.subr.mxu1 %v2866_v34 }
0x1b32   :  { %4129 = vmatpush3.msra.mxu1 %v2866_v34  ;;  %v2957_v47 = vpop.permute.xlu0 %2956 }
0x1b33   :  { %4133 = vmatprep.subr.msk.mxu1 %vm214_vm1, %v2959_v40 }
0x1b34   :  { %v2953_v36 = vpop.permute.xlu1 %2952 }
0x1b36   :  { %v4276_v10 = vpop.eup %4275  ;;  %v2955_v49 = vpop.permute.xlu0 %2954 }
0x1b37   :  { %v2864_v45 = vmul.f32 %v4276_v10, %v4272_v25 }
0x1b38   :  { %v4278_v9 = vpop.eup %4277 }
0x1b39   :  { %v2863_v43 = vmul.f32 %v4278_v9, %v4274_v28 }
0x1b3b   :  { %4130 = vmatprep.mubr.msk.f32.mxu1 %vm214_vm1, %v2863_v43 }
0x1b3c   :  { %4131 = vmatmul.mubr.msk.f32.vlgmr.msra.gmra.mxu1 %vm214_vm1, %v2864_v45 }
0x1b3d   :  { %4134 = vmatpush3.xpose.msk.msra.mxu1 %vm214_vm1, %v2959_v40  ;;  %4137 = vmatprep.mubr.msk.f32.mxu1 %vm214_vm1, %v2953_v36 }
0x1b3e   :  { %4135 = vmatprep.subr.msk.mxu1 %vm214_vm1, %v2957_v47 }
0x1b41   :  { %4136 = vmatpush3.xpose.msk.msra.mxu1 %vm214_vm1, %v2957_v47 }
0x1b42   :  { %4154 = vmatprep.subr.mxu1 %v3697_v38 }
0x1b44   :  { %4138 = vmatmul.mubr.msk.f32.vlgmr.msra.gmra.mxu1 %vm214_vm1, %v2955_v49 }
0x1b45   :  { %4155 = vmatpush3.msra.mxu1 %v3697_v38 }
0x1b46   :  { %4156 = vmatprep.subr.mxu1 %v3696_v50 }
0x1b47   :  { %4157 = vmatpush3.msra.mxu1 %v3696_v50 }
0x1bfc   :  { %v4132_v51 = vpop.f32.mrf.mxu1 }
0x1bfe   :  { %v2943_v42 = vpop.f32.mrf.mxu1 }
0x1bff   :  { %4158 = vmatprep.mubr.msk.f32.mxu1 %vm214_vm1, %v2943_v42 }
0x1c00   :  { %4159 = vmatmul.mubr.msk.f32.vlgmr.msra.gmra.mxu1 %vm214_vm1, %v4132_v51 }
0x1c04   :  { %v4139_v41 = vpop.f32.mrf.mxu1 }
0x1c05   :  { %v3044_v52 = vmul.f32 0.25, %v4139_v41  ;;  %v3718_v41 = vld [vmem:[%s5106_s9 + $0x30] sm:$0xff] }
0x1c06   :  { %v3034_v31 = vpop.f32.mrf.mxu1 }
0x1c07   :  { %v3043_v53 = vmul.f32 0.25, %v3034_v31  ;;  %v3046_v54 = vsel %vm4643_vm2, -1e+30, %v3044_v52  ;;  %v3717_v52 = vld [vmem:[%s5106_s9 + $0x28] sm:$0xff]  ;;  %v3716_v31 = vld [vmem:[%s5106_s9 + $0x20] sm:$0xff] }
0x1c08   :  { %v3050_v14 = vsel %vm214_vm1, %v3046_v54, -inf }
0x1c09   :  { %3051 = vmax.xlane.f32.xlu0 %v3050_v14  ;;  %v3045_v58 = vsel %vm4649_vm3, -1e+30, %v3043_v53  ;;  %v3729_v53 = vld [vmem:[%s5107_s10 + $0x78] sm:$0xff]  ;;  %v3727_v14 = vld [vmem:[%s5107_s10 + $0x68] sm:$0xff] }
0x1c0a   :  { %v3047_v17 = vsel %vm214_vm1, %v3045_v58, -inf  ;;  %4172 = vmatprep.subr.mxu1 %v3729_v53 }
0x1c0b   :  { %3048 = vmax.xlane.f32.xlu1 %v3047_v17  ;;  %4173 = vmatpush3.msra.mxu1 %v3729_v53 }
0x1c92   :  { %v3052_v16 = vpop.xlane.xlu0 %3051 }
0x1c93   :  { %v3054_v27 = vsub.f32 %v3046_v54, %v3052_v16  ;;  %v3728_v54 = vld [vmem:[%s5107_s10 + $0x70] sm:$0xff] }
0x1c94   :  { %v3049_v62 = vpop.xlane.xlu1 %3048  ;;  %4174 = vmatprep.subr.mxu1 %v3728_v54 }
0x1c95   :  { %v3057_v63 = vmul.f32 1.442695, %v3054_v27  ;;  %v3053_v29 = vsub.f32 %v3045_v58, %v3049_v62  ;;  %4175 = vmatpush3.msra.mxu1 %v3728_v54  ;;  %v3726_v58 = vld [vmem:[%s5107_s10 + $0x60] sm:$0xff] }
0x1c96   :  { %4176 = vmatprep.subr.mxu1 %v3727_v14 }
0x1c97   :  { %4279 = vpow2.f32 %v3057_v63  ;;  %v3055_v2 = vmul.f32 1.442695, %v3053_v29  ;;  %4177 = vmatpush3.msra.mxu1 %v3727_v14 }
0x1c98   :  { %4178 = vmatprep.subr.mxu1 %v3726_v58 }
0x1c99   :  { %4281 = vpow2.f32 %v3055_v2  ;;  %4179 = vmatpush3.msra.mxu1 %v3726_v58  ;;  %v3355_v2 = vrot.slane %v4893_v57, %v1618_v0  ;;  %v3725_v0 = vld [vmem:[%s5107_s10 + $0x58] sm:$0xff] }
0x1c9a   :  { %4180 = vmatprep.subr.mxu1 %v3725_v0  ;;  %v3732_v58 = vld [vmem:[%s5108_s11 + $0x18] ss:$0 sm:$0xff] }
0x1c9b   :  { %4181 = vmatpush3.msra.mxu1 %v3725_v0 }
0x1ca4   :  { %v4280_v3 = vpop.eup %4279 }
0x1ca5   :  { %v3062_v61 = vsel %vm214_vm1, %v4280_v3, 0.0 }
0x1ca6   :  { %v4282_v4 = vpop.eup %4281  ;;  %3063 = vadd.xlane.f32.xlu1 %v3062_v61 }
0x1ca7   :  { %v3059_v48 = vsel %vm214_vm1, %v4282_v4, 0.0 }
0x1ca8   :  { %3060 = vadd.xlane.f32.xlu0 %v3059_v48  ;;  %v3361_v48 = vrot.slane %v4893_v57, %v1624_v5  ;;  %v3724_v5 = vld [vmem:[%s5107_s10 + $0x50] sm:$0xff] }
0x1ca9   :  { %4182 = vmatprep.subr.mxu1 %v3724_v5 }
0x1caa   :  { %4183 = vmatpush3.msra.mxu1 %v3724_v5 }
0x1cb7   :  { %3069 = vrot.lane.b32.xlu1 %v4951_v60, %s4318_s0 }
0x1cbe   :  { %3071 = vrot.lane.b32.xlu0 %v4947_v59, %s4318_s0  ;;  %v3698_v59 = vld [vmem:[%s5105_s8 + $0x30] sm:$0xff]  ;;  %s3601_s0 = sshll.u32 %s4326_s16, 4  ;;  %s3602_s0 = int_to_ptr.vmem [resolvable:$true] %s3601_s0 }
0x1cbf   :  { %s4296_s17 = scalar_lea.vmem %s3602_s0, 256  ;;  %p4301_p1 = scmp.lt.s32.totalorder %s3602_s0, %s3602_s0 }
0x1cc0   :  { %v4160_v22 = vpop.f32.mrf.mxu1  ;;  %p4297_p0 = scmp.ne.s32.totalorder %s3602_s0, %s4296_s17  ;;  %p4302_p2 = scmp.lt.s32.totalorder %s4296_s17, %s4296_s17 }
0x1cc2   :  { %v3309_v28 = vpop.f32.mrf.mxu1  ;;  %p4303_p3 = por %p4302_p2, %p4301_p1 }
0x1cc4   :  { %p4304_p4 = pnand %p4303_p3, %p4297_p0 }
0x1d2f   :  { %v3064_v1 = vpop.xlane.xlu1 %3063 }
0x1d30   :  { %4283 = vrcp.f32 %v3064_v1 }
0x1d31   :  { %v3061_v11 = vpop.xlane.xlu0 %3060 }
0x1d32   :  { %4285 = vrcp.f32 %v3061_v11 }
0x1d33   :  { %v3070_v46 = vpop.permute.xlu1 %3069 }
0x1d35   :  { %v3072_v13 = vpop.permute.xlu0 %3071 }
0x1d36   :  { %4140 = vmatprep.subr.mxu0 %v3072_v13 }
0x1d37   :  { %4141 = vmatpush3.msra.mxu0 %v3072_v13 }
0x1d38   :  { %4142 = vmatprep.subr.mxu0 %v3070_v46 }
0x1d39   :  { %4143 = vmatpush3.msra.mxu0 %v3070_v46 }
0x1d3a   :  { %4147 = vmatprep.subr.mxu0 %v3699_v26 }
0x1d3d   :  { %v4284_v8 = vpop.eup %4283 }
0x1d3e   :  { %v3068_v18 = vmul.f32 %v4284_v8, %v4280_v3 }
0x1d3f   :  { %v4286_v60 = vpop.eup %4285 }
0x1d40   :  { %v3067_v15 = vmul.f32 %v4286_v60, %v4282_v4 }
0x1d42   :  { %4144 = vmatprep.mubr.msk.f32.mxu0 %vm214_vm1, %v3067_v15  ;;  %v3723_v15 = vld [vmem:[%s5107_s10 + $0x48] sm:$0xff] }
0x1d43   :  { %4145 = vmatmul.mubr.msk.f32.vlgmr.msra.gmra.mxu0 %vm214_vm1, %v3068_v18  ;;  %4184 = vmatprep.subr.mxu1 %v3723_v15  ;;  %v3722_v18 = vld [vmem:[%s5107_s10 + $0x40] sm:$0xff] }
0x1d44   :  { %4148 = vmatpush3.msra.mxu0 %v3699_v26  ;;  %4185 = vmatpush3.msra.mxu1 %v3723_v15 }
0x1d45   :  { %4149 = vmatprep.subr.mxu0 %v3698_v59  ;;  %4186 = vmatprep.subr.mxu1 %v3722_v18 }
0x1d46   :  { %4150 = vmatpush3.msra.mxu0 %v3698_v59  ;;  %4187 = vmatpush3.msra.mxu1 %v3722_v18  ;;  %v3374_v59 = vrot.slane %v4810_v44, %v4708_v19 }
0x1e03   :  { %v4146_v20 = vpop.f32.mrf.mxu0 }
0x1e05   :  { %v3147_v21 = vpop.f32.mrf.mxu0 }
0x1e06   :  { %4151 = vmatprep.mubr.msk.f32.mxu0 %vm214_vm1, %v3147_v21 }
0x1e07   :  { %4152 = vmatmul.mubr.msk.f32.vlgmr.msra.gmra.mxu0 %vm214_vm1, %v4146_v20 }
0x1ec7   :  { %v4153_v25 = vpop.f32.mrf.mxu0 }
0x1ec8   :  { %v3315_v24 = vadd.f32 %v4160_v22, %v4153_v25 }
0x1ec9   :  { %v3228_v12 = vpop.f32.mrf.mxu0 }
0x1eca   :  { %v3323_v30 = vadd.f32 %v3321_v23, %v3315_v24  ;;  %v3310_v32 = vadd.f32 %v3309_v28, %v3228_v12  ;;  %v3470_v28 = vrot.slane %v4893_v57, %v1731_v33 }
0x1ecc   :  { %v3322_v34 = vadd.f32 %v3321_v23, %v3310_v32  ;;  %v3325_v37 = vadd.f32 %v3323_v30, %v4939_v56 }
0x1ece   :  { %v3329_v40 = vsel %vm122_vm0, %v3325_v37, 0.0  ;;  %v3324_v10 = vadd.f32 %v3322_v34, %v4936_v55  ;;  %v3719_v55 = vld [vmem:[%s5106_s9 + $0x38] sm:$0xff] }
0x1ecf   :  { %3330 = vadd.xlane.f32.xlu0 %v3329_v40  ;;  %4161 = vmatprep.subr.mxu0 %v3719_v55 }
0x1ed0   :  { %v3326_v9 = vsel %vm122_vm0, %v3324_v10, 0.0  ;;  %4162 = vmatpush3.msra.mxu0 %v3719_v55 }
0x1ed1   :  { %3327 = vadd.xlane.f32.xlu1 %v3326_v9  ;;  %4163 = vmatprep.subr.mxu0 %v3718_v41 }
0x1ed2   :  { %4164 = vmatpush3.msra.mxu0 %v3718_v41 }
0x1ed3   :  { %4165 = vmatprep.subr.mxu0 %v3717_v52 }
0x1ed4   :  { %4166 = vmatpush3.msra.mxu0 %v3717_v52 }
0x1ed5   :  { %4167 = vmatprep.subr.mxu0 %v3716_v31 }
0x1ed6   :  { %4168 = vmatpush3.msra.mxu0 %v3716_v31  ;;  %v3583_v31 = vrot.slane %v4893_v57, %v1845_v6 }
0x1f58   :  { %v3331_v43 = vpop.xlane.xlu0 %3330 }
0x1f59   :  { %v3333_v45 = vmul.f32 0.03125, %v3331_v43 }
0x1f5a   :  { %v3328_v36 = vpop.xlane.xlu1 %3327 }
0x1f5b   :  { %v3335_v47 = vsub.f32 %v3325_v37, %v3333_v45  ;;  %v3332_v49 = vmul.f32 0.03125, %v3328_v36 }
0x1f5d   :  { %v3334_v38 = vsub.f32 %v3324_v10, %v3332_v49  ;;  %v3337_v50 = vmul.f32 %v3335_v47, %v3335_v47 }
0x1f5f   :  { %v3341_v51 = vsel %vm122_vm0, %v3337_v50, 0.0  ;;  %v3336_v42 = vmul.f32 %v3334_v38, %v3334_v38 }
0x1f60   :  { %3342 = vadd.xlane.f32.xlu1 %v3341_v51 }
0x1f61   :  { %v3338_v56 = vsel %vm122_vm0, %v3336_v42, 0.0 }
0x1f62   :  { %3339 = vadd.xlane.f32.xlu0 %v3338_v56 }
0x1fe9   :  { %v3343_v17 = vpop.xlane.xlu1 %3342 }
0x1fea   :  { %v3345_v16 = vmul.f32 0.03125, %v3343_v17 }
0x1feb   :  { %v3340_v27 = vpop.xlane.xlu0 %3339 }
0x1fec   :  { %v3347_v62 = vadd.f32 1e-05, %v3345_v16  ;;  %v3344_v63 = vmul.f32 0.03125, %v3340_v27 }
0x1fee   :  { %4287 = vrsqrt.f32 %v3347_v62  ;;  %v3346_v29 = vadd.f32 1e-05, %v3344_v63 }
0x1ff0   :  { %4289 = vrsqrt.f32 %v3346_v29 }
0x1ffb   :  { %v4288_v3 = vpop.eup %4287 }
0x1ffc   :  { %v3351_v61 = vmul.f32 %v4288_v3, %v3335_v47 }
0x1ffd   :  { %v4290_v4 = vpop.eup %4289 }
0x1ffe   :  { %v3350_v1 = vmul.f32 %v4290_v4, %v3334_v38  ;;  %v3357_v11 = vmul.f32 %v3355_v2, %v3351_v61 }
0x2000   :  { %v3356_v13 = vmul.f32 %v3355_v2, %v3350_v1  ;;  %v3363_v46 = vadd.f32 %v3361_v48, %v3357_v11 }
0x2002   :  { %v3362_v26 = vadd.f32 %v3361_v48, %v3356_v13  ;;  %v3365_v60 = vmul.f32 %v3363_v46, %v4605_v39 }
0x2004   :  { %v3364_v8 = vmul.f32 %v3362_v26, %v4603_v35 }
0x2006   :  { %4169 = vmatprep.mubr.msk.f32.mxu0 %vm122_vm0, %v3364_v8 }
0x2007   :  { %4170 = vmatmul.mubr.msk.f32.vlgmr.msra.gmra.mxu0 %vm122_vm0, %v3365_v60 }
0x20c7   :  { %v4171_v20 = vpop.f32.mrf.mxu0 }
0x20c8   :  { %v3453_v21 = vadd.f32 %v4171_v20, %v3374_v59 }
0x20c9   :  { %v3447_v22 = vpop.f32.mrf.mxu0 }
0x20ca   :  { %v3448_v23 = vadd.f32 %v3447_v22, %v3374_v59  ;;  %v3457_v24 = vmax.f32 %v3453_v21, 0.0 }
0x20cc   :  { %v3456_v25 = vmax.f32 %v3448_v23, 0.0 }
0x20ce   :  { %4188 = vmatprep.mubr.msk.f32.mxu1 %vm1733_vm4, %v3456_v25 }
0x20cf   :  { %4189 = vmatmul.mubr.msk.f32.vlgmr.msra.gmra.mxu1 %vm1733_vm4, %v3457_v24 }
0x218f   :  { %v4190_v12 = vpop.f32.mrf.mxu1 }
0x2190   :  { %v3549_v30 = vadd.f32 %v4190_v12, %v3470_v28 }
0x2191   :  { %v3543_v32 = vpop.f32.mrf.mxu1 }
0x2192   :  { %v3553_v34 = vadd.f32 %v3549_v30, %v3365_v60  ;;  %v3544_v37 = vadd.f32 %v3543_v32, %v3470_v28 }
0x2194   :  { %v3557_v19 = vsel %vm122_vm0, %v3553_v34, 0.0  ;;  %v3552_v44 = vadd.f32 %v3544_v37, %v3364_v8 }
0x2195   :  { %3558 = vadd.xlane.f32.xlu1 %v3557_v19 }
0x2196   :  { %v3554_v40 = vsel %vm122_vm0, %v3552_v44, 0.0 }
0x2197   :  { %3555 = vadd.xlane.f32.xlu0 %v3554_v40 }
0x221e   :  { %v3559_v10 = vpop.xlane.xlu1 %3558 }
0x221f   :  { %v3561_v9 = vmul.f32 0.03125, %v3559_v10 }
0x2220   :  { %v3556_v43 = vpop.xlane.xlu0 %3555 }
0x2221   :  { %v3563_v45 = vsub.f32 %v3553_v34, %v3561_v9  ;;  %v3560_v36 = vmul.f32 0.03125, %v3556_v43 }
0x2223   :  { %v3562_v47 = vsub.f32 %v3552_v44, %v3560_v36  ;;  %v3565_v49 = vmul.f32 %v3563_v45, %v3563_v45 }
0x2225   :  { %v3569_v33 = vsel %vm122_vm0, %v3565_v49, 0.0  ;;  %v3564_v38 = vmul.f32 %v3562_v47, %v3562_v47 }
0x2226   :  { %3570 = vadd.xlane.f32.xlu1 %v3569_v33 }
0x2227   :  { %v3566_v50 = vsel %vm122_vm0, %v3564_v38, 0.0 }
0x2228   :  { %3567 = vadd.xlane.f32.xlu0 %v3566_v50 }
0x22af   :  { %v3571_v51 = vpop.xlane.xlu1 %3570 }
0x22b0   :  { %v3573_v42 = vmul.f32 0.03125, %v3571_v51 }
0x22b1   :  { %v3568_v56 = vpop.xlane.xlu0 %3567 }
0x22b2   :  { %v3575_v55 = vadd.f32 1e-05, %v3573_v42  ;;  %v3572_v41 = vmul.f32 0.03125, %v3568_v56 }
0x22b4   :  { %4291 = vrsqrt.f32 %v3575_v55  ;;  %v3574_v52 = vadd.f32 1e-05, %v3572_v41 }
0x22b6   :  { %4293 = vrsqrt.f32 %v3574_v52 }
0x22c1   :  { %v4292_v53 = vpop.eup %4291 }
0x22c2   :  { %v3579_v54 = vmul.f32 %v4292_v53, %v3563_v45 }
0x22c3   :  { %v4294_v14 = vpop.eup %4293 }
0x22c4   :  { %v3578_v17 = vmul.f32 %v4294_v14, %v3562_v47  ;;  %v3585_v16 = vmul.f32 %v3583_v31, %v3579_v54 }
0x22c6   :  { %v3584_v27 = vmul.f32 %v3583_v31, %v3578_v17  ;;  %v3591_v62 = vadd.f32 %v3732_v58, %v3585_v16 }
0x22c8   :  { %v3590_v63 = vadd.f32 %v3732_v58, %v3584_v27  ;;  %v3593_v29 = vmul.f32 %v3591_v62, %v4605_v39 }
0x22ca   :  { %v3592_v7 = vmul.f32 %v3590_v63, %v4603_v35  ;;  %3595 = vst.msk [vmem:[#allocation2 + $0x8] sm:$0xff] %vm122_vm0, %v3593_v29 }
0x22cc   :  { %3594 = vst.msk [vmem:[#allocation2] sm:$0xff] %vm122_vm0, %v3592_v7 }
0x22cd   :  { %4307 = shalt.err (!%p4304_p4)
}
0x22ce   :  { %s4327_s11 = smov 128   ;;  %s4328_s8 = smov 8  }
0x22cf   :  { %3607 = dma.vmem_to_hbm [thread:$0]  %s3602_s0, 256, %s5110_s13, [#allocation3], %s4327_s11, %s4327_s11, %s4328_s8  }
0x22d0   :  { %4316 = dma.done.wait [#allocation3], 256  }
0x22d1   :  { %4317 = vsyncadd [#allocation3], 4294967040 }
0x22d2   :  { %3611 = vsyncpa [#allocation3], 1 }

</bundles_post_ra>
